<compile_context>
chip_gen: v7x
topology: tpu7x:2x2x1
jax: 0.10.0
libtpu: 0.0.40
codegen_flags: <defaults>
</compile_context>

<pallas_src>
import functools
import math

import jax
import jax.numpy as jnp
from jax.experimental import pallas as pl
from jax.experimental.pallas import tpu as pltpu


def ae_loss_kernel(x_ref, w1_ref, b1_ref, w23_ref, b23_ref, w4_ref, b4_ref,
                   sse_ref, *, tile_b, batch):
    """One batch tile of the fused AE forward + partial MSE sum-of-squares.

    x_ref:   [TILE_B, D]  f32 flattened images (streamed per grid step)
    w1_ref:  [D, HID]     bf16 encoder layer-1 weight  (VMEM resident)
    b1_ref:  [1, HID]     f32 encoder layer-1 bias
    w23_ref: [HID, HID]   bf16 fused (enc layer-2 @ dec layer-1) weight
    b23_ref: [1, HID]     f32 fused bias (b2 @ w3 + b3)
    w4_ref:  [HID, D]     bf16 decoder output weight
    b4_ref:  [1, D]       f32 decoder output bias
    sse_ref: [8, 128]     per-block partial sum of squared error (broadcast)
    """
    x_f32 = x_ref[...]                              # f32 copy kept for the MSE
    x = x_f32.astype(jnp.bfloat16)

    # Encoder layer 1 + ReLU (bf16 MXU, f32 accumulate).
    h1 = jnp.dot(x, w1_ref[...], preferred_element_type=jnp.float32) + b1_ref[...]
    h1 = jnp.maximum(h1, 0.0)

    # Fused encoder-layer-2 / decoder-layer-1 (linear @ linear) + ReLU.
    h2 = jnp.dot(h1.astype(jnp.bfloat16), w23_ref[...],
                 preferred_element_type=jnp.float32) + b23_ref[...]
    h2 = jnp.maximum(h2, 0.0)

    # Decoder output layer.
    out = jnp.dot(h2.astype(jnp.bfloat16), w4_ref[...],
                  preferred_element_type=jnp.float32) + b4_ref[...]

    # Partial MSE: sum of squared error for this tile, diff vs the f32 images.
    diff = out - x_f32
    if batch % tile_b != 0:
        # Mask rows that exist only because the batch was padded to TILE_B.
        row = (pl.program_id(0) * tile_b
               + jax.lax.broadcasted_iota(jnp.int32, (tile_b, 1), 0))
        diff = jnp.where(row < batch, diff, 0.0)
    sse = jnp.sum(diff * diff)
    # Lane/sublane-aligned (8, 128) output tile; host reads [8*i, 0] per block.
    sse_ref[...] = jnp.full((8, 128), sse, dtype=jnp.float32)


def autoencoder_loss(images_nchw, params, *, tile_b=512):
    """Flatten NCHW images, run the batch-tiled fused kernel, finish mean in JAX."""
    B = images_nchw.shape[0]
    D = math.prod(images_nchw.shape[1:])
    x = images_nchw.reshape(B, D).astype(jnp.float32)

    (w1, b1), (w2, b2), (w3, b3), (w4, b4) = params
    HID = w1.shape[1]

    # Clamp the batch tile for tiny batches (keep a multiple of 8 sublanes);
    # large batches use the full tile to amortize per-grid-step overhead.
    b_round8 = ((B + 7) // 8) * 8
    tile_b = max(8, min(tile_b, b_round8))

    # Algebraic fusion of the latent pair (no nonlinearity between them).
    w23 = jnp.dot(w2, w3)
    b23 = jnp.dot(b2, w3) + b3

    # bf16 weights feed the MXU directly; biases stay f32 (added post-accum).
    w1b = w1.astype(jnp.bfloat16)
    w23b = w23.astype(jnp.bfloat16)
    w4b = w4.astype(jnp.bfloat16)

    # Pad the batch to a multiple of TILE_B (padded rows are masked in-kernel).
    b_pad = ((B + tile_b - 1) // tile_b) * tile_b
    if b_pad != B:
        x = jnp.pad(x, ((0, b_pad - B), (0, 0)))
    n_blocks = b_pad // tile_b

    kernel = functools.partial(ae_loss_kernel, tile_b=tile_b, batch=B)
    partials = pl.pallas_call(
        kernel,
        out_shape=jax.ShapeDtypeStruct((n_blocks * 8, 128), jnp.float32),
        grid=(n_blocks,),
        in_specs=[
            pl.BlockSpec((tile_b, D), lambda i: (i, 0)),   # x: streamed per tile
            pl.BlockSpec((D, HID), lambda i: (0, 0)),      # w1: VMEM resident
            pl.BlockSpec((1, HID), lambda i: (0, 0)),      # b1
            pl.BlockSpec((HID, HID), lambda i: (0, 0)),    # w23 (fused)
            pl.BlockSpec((1, HID), lambda i: (0, 0)),      # b23 (fused)
            pl.BlockSpec((HID, D), lambda i: (0, 0)),      # w4
            pl.BlockSpec((1, D), lambda i: (0, 0)),        # b4
        ],
        out_specs=pl.BlockSpec((8, 128), lambda i: (i, 0)),
        compiler_params=pltpu.CompilerParams(
            dimension_semantics=("parallel",),
            vmem_limit_bytes=48 * 1024 * 1024,
        ),
    )(x, w1b, b1, w23b, b23, w4b, b4)

    # One scalar per grid block lives at [8*i, 0]; finish the mean here so the
    # kernel grid stays dependency-free ("parallel" across TensorCores).
    sse_total = jnp.sum(partials[0::8, 0])
    return sse_total / jnp.float32(B * D)


def _linear_params(key, fan_in, fan_out):
    """Deterministic PyTorch-style Linear init: U(-1/sqrt(fan_in), 1/sqrt(fan_in))."""
    kw, kb = jax.random.split(key)
    bound = 1.0 / jnp.sqrt(jnp.float32(fan_in))
    w = jax.random.uniform(kw, (fan_in, fan_out), jnp.float32, -bound, bound)
    b = jax.random.uniform(kb, (1, fan_out), jnp.float32, -bound, bound)
    return w, b


def _reference_loss_f32(images_nchw, params):
    """Pure-JAX f32, unfused reference of the module's forward pass."""
    B = images_nchw.shape[0]
    x = images_nchw.reshape(B, -1).astype(jnp.float32)
    (w1, b1), (w2, b2), (w3, b3), (w4, b4) = params
    h1 = jnp.maximum(x @ w1 + b1, 0.0)
    z = h1 @ w2 + b2
    h2 = jnp.maximum(z @ w3 + b3, 0.0)
    out = h2 @ w4 + b4
    return jnp.mean((out - x) ** 2)


def _reference_loss_kernel_math(images_nchw, params):
    """Plain-JAX mirror of the kernel arithmetic (fused latent, bf16 matmuls)."""
    B = images_nchw.shape[0]
    x = images_nchw.reshape(B, -1).astype(jnp.float32)
    (w1, b1), (w2, b2), (w3, b3), (w4, b4) = params
    w23 = jnp.dot(w2, w3)
    b23 = jnp.dot(b2, w3) + b3
    bf = jnp.bfloat16
    h1 = jnp.maximum(jnp.dot(x.astype(bf), w1.astype(bf),
                             preferred_element_type=jnp.float32) + b1, 0.0)
    h2 = jnp.maximum(jnp.dot(h1.astype(bf), w23.astype(bf),
                             preferred_element_type=jnp.float32) + b23, 0.0)
    out = jnp.dot(h2.astype(bf), w4.astype(bf),
                  preferred_element_type=jnp.float32) + b4
    return jnp.mean((out - x) ** 2)


if __name__ == "__main__":
    # Small shapes consistent with an image autoencoder forward.
    B, C, H, W = 2, 4, 16, 16
    D = C * H * W          # 1024 flattened input dim
    HID = 256              # hidden width
    LAT = 32               # latent dim

    key = jax.random.PRNGKey(0)
    k_img, k1, k2, k3, k4 = jax.random.split(key, 5)

    images = jax.random.normal(k_img, (B, C, H, W), jnp.float32)

    params = (
        _linear_params(k1, D, HID),    # encoder layer 1
        _linear_params(k2, HID, LAT),  # encoder layer 2 (to latent)
        _linear_params(k3, LAT, HID),  # decoder layer 1
        _linear_params(k4, HID, D),    # decoder layer 2 (to image dim)
    )

    loss_fn = jax.jit(autoencoder_loss)
    loss = jax.block_until_ready(loss_fn(images, params))

    # Tight check vs. a plain-JAX mirror of the kernel arithmetic.
    ref_exact = _reference_loss_kernel_math(images, params)
    assert jnp.allclose(loss, ref_exact, rtol=5e-3, atol=1e-5), (loss, ref_exact)
    # Looser sanity check vs. the unfused f32 module semantics.
    ref_f32 = _reference_loss_f32(images, params)
    assert jnp.allclose(loss, ref_f32, rtol=5e-2, atol=1e-3), (loss, ref_f32)

    print("KERNEL_OK")
</pallas_src>

<mosaic_0001>
module attributes {stable_mosaic.version = 11 : i64} {
  func.func @ae_loss_kernel(%arg0: i32, %arg1: memref<8x1024xf32, #tpu.memory_space<vmem>>, %arg2: memref<1024x256xbf16, #tpu.memory_space<vmem>>, %arg3: memref<1x256xf32, #tpu.memory_space<vmem>>, %arg4: memref<256x256xbf16, #tpu.memory_space<vmem>>, %arg5: memref<1x256xf32, #tpu.memory_space<vmem>>, %arg6: memref<256x1024xbf16, #tpu.memory_space<vmem>>, %arg7: memref<1x1024xf32, #tpu.memory_space<vmem>>, %arg8: memref<8x128xf32, #tpu.memory_space<vmem>>) attributes {dimension_semantics = [#tpu.dimension_semantics<parallel>], iteration_bounds = array<i64: 1>, scalar_prefetch = 0 : i64, scratch_operands = 0 : i64, tpu.core_type = #tpu.core_type<tc>, window_params = [{transform_indices = @transform_0, window_bounds = array<i64: 8, 1024>}, {pipeline_mode = #tpu.pipeline_mode<synchronous>, transform_indices = @transform_1, window_bounds = array<i64: 1024, 256>}, {pipeline_mode = #tpu.pipeline_mode<synchronous>, transform_indices = @transform_2, window_bounds = array<i64: 1, 256>}, {pipeline_mode = #tpu.pipeline_mode<synchronous>, transform_indices = @transform_3, window_bounds = array<i64: 256, 256>}, {pipeline_mode = #tpu.pipeline_mode<synchronous>, transform_indices = @transform_4, window_bounds = array<i64: 1, 256>}, {pipeline_mode = #tpu.pipeline_mode<synchronous>, transform_indices = @transform_5, window_bounds = array<i64: 256, 1024>}, {pipeline_mode = #tpu.pipeline_mode<synchronous>, transform_indices = @transform_6, window_bounds = array<i64: 1, 1024>}, {transform_indices = @transform_7, window_bounds = array<i64: 8, 128>}]} {
    %c0 = arith.constant 0 : index
    %c0_0 = arith.constant 0 : index
    %0 = vector.load %arg1[%c0, %c0_0] : memref<8x1024xf32, #tpu.memory_space<vmem>>, vector<8x1024xf32>
    %1 = arith.truncf %0 : vector<8x1024xf32> to vector<8x1024xbf16>
    %c0_1 = arith.constant 0 : index
    %c0_2 = arith.constant 0 : index
    %2 = vector.load %arg2[%c0_1, %c0_2] : memref<1024x256xbf16, #tpu.memory_space<vmem>>, vector<1024x256xbf16>
    %cst = arith.constant dense<0.000000e+00> : vector<8x256xf32>
    %3 = tpu.matmul %1, %2, %cst {dimension_numbers = #tpu.dot_dimension_numbers<[1], [0], [0], [1], [0, 0, 1, 1], [], []>} : vector<8x1024xbf16>, vector<1024x256xbf16>, vector<8x256xf32> -> vector<8x256xf32>
    %c0_3 = arith.constant 0 : index
    %c0_4 = arith.constant 0 : index
    %4 = vector.load %arg3[%c0_3, %c0_4] : memref<1x256xf32, #tpu.memory_space<vmem>>, vector<1x256xf32>
    %5 = vector.broadcast %4 : vector<1x256xf32> to vector<8x256xf32>
    %6 = arith.addf %3, %5 : vector<8x256xf32>
    %cst_5 = arith.constant 0.000000e+00 : f32
    %7 = vector.broadcast %cst_5 : f32 to vector<8x256xf32>
    %8 = arith.maximumf %6, %7 : vector<8x256xf32>
    %9 = arith.truncf %8 : vector<8x256xf32> to vector<8x256xbf16>
    %c0_6 = arith.constant 0 : index
    %c0_7 = arith.constant 0 : index
    %10 = vector.load %arg4[%c0_6, %c0_7] : memref<256x256xbf16, #tpu.memory_space<vmem>>, vector<256x256xbf16>
    %cst_8 = arith.constant dense<0.000000e+00> : vector<8x256xf32>
    %11 = tpu.matmul %9, %10, %cst_8 {dimension_numbers = #tpu.dot_dimension_numbers<[1], [0], [0], [1], [0, 0, 1, 1], [], []>} : vector<8x256xbf16>, vector<256x256xbf16>, vector<8x256xf32> -> vector<8x256xf32>
    %c0_9 = arith.constant 0 : index
    %c0_10 = arith.constant 0 : index
    %12 = vector.load %arg5[%c0_9, %c0_10] : memref<1x256xf32, #tpu.memory_space<vmem>>, vector<1x256xf32>
    %13 = vector.broadcast %12 : vector<1x256xf32> to vector<8x256xf32>
    %14 = arith.addf %11, %13 : vector<8x256xf32>
    %cst_11 = arith.constant 0.000000e+00 : f32
    %15 = vector.broadcast %cst_11 : f32 to vector<8x256xf32>
    %16 = arith.maximumf %14, %15 : vector<8x256xf32>
    %17 = arith.truncf %16 : vector<8x256xf32> to vector<8x256xbf16>
    %c0_12 = arith.constant 0 : index
    %c0_13 = arith.constant 0 : index
    %18 = vector.load %arg6[%c0_12, %c0_13] : memref<256x1024xbf16, #tpu.memory_space<vmem>>, vector<256x1024xbf16>
    %cst_14 = arith.constant dense<0.000000e+00> : vector<8x1024xf32>
    %19 = tpu.matmul %17, %18, %cst_14 {dimension_numbers = #tpu.dot_dimension_numbers<[1], [0], [0], [1], [0, 0, 1, 1], [], []>} : vector<8x256xbf16>, vector<256x1024xbf16>, vector<8x1024xf32> -> vector<8x1024xf32>
    %c0_15 = arith.constant 0 : index
    %c0_16 = arith.constant 0 : index
    %20 = vector.load %arg7[%c0_15, %c0_16] : memref<1x1024xf32, #tpu.memory_space<vmem>>, vector<1x1024xf32>
    %21 = vector.broadcast %20 : vector<1x1024xf32> to vector<8x1024xf32>
    %22 = arith.addf %19, %21 : vector<8x1024xf32>
    %23 = arith.subf %22, %0 : vector<8x1024xf32>
    %c8_i32 = arith.constant 8 : i32
    %24 = arith.muli %arg0, %c8_i32 : i32
    %25 = tpu.iota {dimensions = array<i32: 0>} : vector<8x1xi32>
    %26 = vector.broadcast %24 : i32 to vector<8x1xi32>
    %27 = arith.addi %26, %25 : vector<8x1xi32>
    %c2_i32 = arith.constant 2 : i32
    %28 = vector.broadcast %c2_i32 : i32 to vector<8x1xi32>
    %29 = arith.cmpi slt, %27, %28 : vector<8x1xi32>
    %cst_17 = arith.constant 0.000000e+00 : f32
    %30 = vector.shape_cast %29 : vector<8x1xi1> to vector<8x1xi1>
    %31 = vector.broadcast %30 : vector<8x1xi1> to vector<8x1024xi1>
    %32 = vector.broadcast %cst_17 : f32 to vector<8x1024xf32>
    %33 = arith.select %31, %23, %32 : vector<8x1024xi1>, vector<8x1024xf32>
    %34 = arith.mulf %33, %33 : vector<8x1024xf32>
    %35 = vector.shape_cast %34 : vector<8x1024xf32> to vector<1x8x1024xf32>
    %cst_18 = arith.constant dense<0.000000e+00> : vector<1xf32>
    %36 = vector.multi_reduction <add>, %35, %cst_18 [1, 2] : vector<1x8x1024xf32> to vector<1xf32>
    %37 = vector.shape_cast %36 : vector<1xf32> to vector<1x1x1xf32>
    %38 = vector.extract %37[0, 0, 0] : f32 from vector<1x1x1xf32>
    %39 = vector.broadcast %38 : f32 to vector<8x128xf32>
    %c0_19 = arith.constant 0 : index
    %c0_20 = arith.constant 0 : index
    %40 = vector.load %arg8[%c0_19, %c0_20] : memref<8x128xf32, #tpu.memory_space<vmem>>, vector<8x128xf32>
    tpu.vector_store %arg8[%c0_19, %c0_20], %39 {strides = array<i32>} : memref<8x128xf32, #tpu.memory_space<vmem>>, vector<8x128xf32>,
    return
  }
  func.func @transform_0(%arg0: i32) -> (i32, i32) {
    %c0_i32 = arith.constant 0 : i32
    %c0_i32_0 = arith.constant 0 : i32
    return %arg0, %c0_i32 : i32, i32
  }
  func.func @transform_1(%arg0: i32) -> (i32, i32) {
    %c0_i32 = arith.constant 0 : i32
    %c0_i32_0 = arith.constant 0 : i32
    %c0_i32_1 = arith.constant 0 : i32
    return %c0_i32, %c0_i32_0 : i32, i32
  }
  func.func @transform_2(%arg0: i32) -> (i32, i32) {
    %c0_i32 = arith.constant 0 : i32
    %c0_i32_0 = arith.constant 0 : i32
    %c0_i32_1 = arith.constant 0 : i32
    return %c0_i32, %c0_i32_0 : i32, i32
  }
  func.func @transform_3(%arg0: i32) -> (i32, i32) {
    %c0_i32 = arith.constant 0 : i32
    %c0_i32_0 = arith.constant 0 : i32
    %c0_i32_1 = arith.constant 0 : i32
    return %c0_i32, %c0_i32_0 : i32, i32
  }
  func.func @transform_4(%arg0: i32) -> (i32, i32) {
    %c0_i32 = arith.constant 0 : i32
    %c0_i32_0 = arith.constant 0 : i32
    %c0_i32_1 = arith.constant 0 : i32
    return %c0_i32, %c0_i32_0 : i32, i32
  }
  func.func @transform_5(%arg0: i32) -> (i32, i32) {
    %c0_i32 = arith.constant 0 : i32
    %c0_i32_0 = arith.constant 0 : i32
    %c0_i32_1 = arith.constant 0 : i32
    return %c0_i32, %c0_i32_0 : i32, i32
  }
  func.func @transform_6(%arg0: i32) -> (i32, i32) {
    %c0_i32 = arith.constant 0 : i32
    %c0_i32_0 = arith.constant 0 : i32
    %c0_i32_1 = arith.constant 0 : i32
    return %c0_i32, %c0_i32_0 : i32, i32
  }
  func.func @transform_7(%arg0: i32) -> (i32, i32) {
    %c0_i32 = arith.constant 0 : i32
    %c0_i32_0 = arith.constant 0 : i32
    return %arg0, %c0_i32 : i32, i32
  }
}

</mosaic_0001>

<bundles_post_ra>
// kernel: autoencoder_loss.1
= control target key start
LH: loop header
LB: loop body
LE: loop exit
PB: predicated region body
PF: predicated region fallthrough
CT: control target
= control target key end

     0   :  { %s3844_s1 = inlined_call_operand.vmem [shape: bf16[1024,256], index: 1, kind: input, shape index: {}]   ;;  %s3845_s0 = inlined_call_operand.vmem [shape: f32[8,1024], index: 0, kind: input, shape index: {}]   ;;  %s3846_s3 = inlined_call_operand.vmem [shape: bf16[256,256], index: 3, kind: input, shape index: {}]   ;;  %s3847_s5 = inlined_call_operand.vmem [shape: bf16[256,1024], index: 5, kind: input, shape index: {}]   ;;  %s3848_s2 = inlined_call_operand.vmem [shape: f32[1,256], index: 2, kind: input, shape index: {}]   ;;  %s3849_s4 = inlined_call_operand.vmem [shape: f32[1,256], index: 4, kind: input, shape index: {}]   ;;  %s3850_s6 = inlined_call_operand.vmem [shape: f32[1,1024], index: 6, kind: input, shape index: {}]   ;;  %s3851_s7 = inlined_call_operand.vmem [shape: f32[8,128], index: 7, kind: output, shape index: {}]  }
   0x1   :  { %v2571_v0 = vld [vmem:[%s3844_s1 + $0x4] ss:$8 sps:$4 sm:$0xff]   ;;  %v2573_v1 = vld [vmem:[%s3844_s1] ss:$8 sps:$4 sm:$0xff]   ;;  %v2574_v2 = vld [vmem:[%s3844_s1 + $0x14] ss:$8 sps:$4 sm:$0xff]  }
   0x2   :  { %822 = vmatprep.subr.bf16.mxu0 %v2571_v0  ;;  %v2576_v3 = vld [vmem:[%s3844_s1 + $0x10] ss:$8 sps:$4 sm:$0xff]   ;;  %v2577_v4 = vld [vmem:[%s3844_s1 + $0x24] ss:$8 sps:$4 sm:$0xff]   ;;  %v2579_v5 = vld [vmem:[%s3844_s1 + $0x20] ss:$8 sps:$4 sm:$0xff]  }
   0x3   :  { %823 = vmatpush1.bf16.msra.mxu0 %v2573_v1  ;;  %v2580_v6 = vld [vmem:[%s3844_s1 + $0x34] ss:$8 sps:$4 sm:$0xff]   ;;  %v2582_v7 = vld [vmem:[%s3844_s1 + $0x30] ss:$8 sps:$4 sm:$0xff]   ;;  %v2583_v8 = vld [vmem:[%s3844_s1 + $0x44] ss:$8 sps:$4 sm:$0xff]  }
   0x4   :  { %824 = vmatprep.subr.bf16.mxu0 %v2574_v2  ;;  %v2585_v9 = vld [vmem:[%s3844_s1 + $0x40] ss:$8 sps:$4 sm:$0xff]   ;;  %v2586_v10 = vld [vmem:[%s3844_s1 + $0x54] ss:$8 sps:$4 sm:$0xff]   ;;  %v2588_v11 = vld [vmem:[%s3844_s1 + $0x50] ss:$8 sps:$4 sm:$0xff]  }
   0x5   :  { %v2589_v12 = vld [vmem:[%s3844_s1 + $0x64] ss:$8 sps:$4 sm:$0xff]   ;;  %v2591_v15 = vld [vmem:[%s3844_s1 + $0x60] ss:$8 sps:$4 sm:$0xff]   ;;  %v2592_v16 = vld [vmem:[%s3844_s1 + $0x74] ss:$8 sps:$4 sm:$0xff]  }
   0x6   :  { %v27_v13 = vld [vmem:[%s3845_s0 + $0x8] sm:$0xff]  ;;  %v2594_v17 = vld [vmem:[%s3844_s1 + $0x70] ss:$8 sps:$4 sm:$0xff]   ;;  %v2598_v20 = vld [vmem:[%s3844_s1 + $0x94] ss:$8 sps:$4 sm:$0xff]  }
   0x7   :  { %825 = vmatpush1.bf16.msra.mxu0 %v2576_v3  ;;  %v35_v14 = vpack.c.bf16 %v27_v13, %v27_v13  ;;  %v2595_v18 = vld [vmem:[%s3844_s1 + $0x84] ss:$8 sps:$4 sm:$0xff]   ;;  %v2597_v19 = vld [vmem:[%s3844_s1 + $0x80] ss:$8 sps:$4 sm:$0xff]   ;;  %v2600_v21 = vld [vmem:[%s3844_s1 + $0x90] ss:$8 sps:$4 sm:$0xff]  }
   0x8   :  { %826 = vmatprep.subr.bf16.mxu0 %v2577_v4  ;;  %v2601_v22 = vld [vmem:[%s3844_s1 + $0xa4] ss:$8 sps:$4 sm:$0xff]   ;;  %v2603_v23 = vld [vmem:[%s3844_s1 + $0xa0] ss:$8 sps:$4 sm:$0xff]   ;;  %v2604_v24 = vld [vmem:[%s3844_s1 + $0xb4] ss:$8 sps:$4 sm:$0xff]  }
   0x9   :  { %854 = vmatprep.mubr.bf16.mxu0 %v35_v14  ;;  %v2606_v25 = vld [vmem:[%s3844_s1 + $0xb0] ss:$8 sps:$4 sm:$0xff]   ;;  %v2607_v26 = vld [vmem:[%s3844_s1 + $0xc4] ss:$8 sps:$4 sm:$0xff]   ;;  %v2609_v27 = vld [vmem:[%s3844_s1 + $0xc0] ss:$8 sps:$4 sm:$0xff]  }
   0xa   :  { %v2610_v28 = vld [vmem:[%s3844_s1 + $0xd4] ss:$8 sps:$4 sm:$0xff]   ;;  %v2612_v29 = vld [vmem:[%s3844_s1 + $0xd0] ss:$8 sps:$4 sm:$0xff]   ;;  %v2613_v30 = vld [vmem:[%s3844_s1 + $0xe4] ss:$8 sps:$4 sm:$0xff]  }
   0xb   :  { %827 = vmatpush1.bf16.msra.mxu0 %v2579_v5  ;;  %v2615_v31 = vld [vmem:[%s3844_s1 + $0xe0] ss:$8 sps:$4 sm:$0xff]   ;;  %v2616_v32 = vld [vmem:[%s3844_s1 + $0xf4] ss:$8 sps:$4 sm:$0xff]   ;;  %v2618_v33 = vld [vmem:[%s3844_s1 + $0xf0] ss:$8 sps:$4 sm:$0xff]  }
   0xc   :  { %828 = vmatprep.subr.bf16.mxu0 %v2580_v6  ;;  %v2621_v34 = vld [vmem:[%s3844_s1 + $0x104] ss:$8 sps:$4 sm:$0xff]   ;;  %v29_v36 = vld [vmem:[%s3845_s0 + $0x18] sm:$0xff]  ;;  %v2619_v38 = vld [vmem:[%s3844_s1 + $0x100] ss:$8 sps:$4 sm:$0xff]  }
   0xd   :  { %v26_v35 = vld [vmem:[%s3845_s0] sm:$0xff]  ;;  %v37_v39 = vpack.c.bf16 %v29_v36, %v29_v36  ;;  %v2624_v40 = vld [vmem:[%s3844_s1 + $0x114] ss:$8 sps:$4 sm:$0xff]   ;;  %v2622_v41 = vld [vmem:[%s3844_s1 + $0x110] ss:$8 sps:$4 sm:$0xff]  }
   0xe   :  { %v34_v37 = vpack.c.bf16 %v26_v35, %v26_v35  ;;  %v2627_v42 = vld [vmem:[%s3844_s1 + $0x124] ss:$8 sps:$4 sm:$0xff]   ;;  %v2625_v43 = vld [vmem:[%s3844_s1 + $0x120] ss:$8 sps:$4 sm:$0xff]   ;;  %v2630_v44 = vld [vmem:[%s3844_s1 + $0x134] ss:$8 sps:$4 sm:$0xff]  }
   0xf   :  { %829 = vmatpush1.bf16.msra.mxu0 %v2582_v7  ;;  %v2628_v45 = vld [vmem:[%s3844_s1 + $0x130] ss:$8 sps:$4 sm:$0xff]   ;;  %v2633_v46 = vld [vmem:[%s3844_s1 + $0x144] ss:$8 sps:$4 sm:$0xff]   ;;  %v2631_v47 = vld [vmem:[%s3844_s1 + $0x140] ss:$8 sps:$4 sm:$0xff]  }
  0x10   :  { %830 = vmatprep.subr.bf16.mxu0 %v2583_v8  ;;  %v2636_v48 = vld [vmem:[%s3844_s1 + $0x154] ss:$8 sps:$4 sm:$0xff]   ;;  %v2634_v49 = vld [vmem:[%s3844_s1 + $0x150] ss:$8 sps:$4 sm:$0xff]   ;;  %v2639_v50 = vld [vmem:[%s3844_s1 + $0x164] ss:$8 sps:$4 sm:$0xff]  }
  0x11   :  { %v2637_v51 = vld [vmem:[%s3844_s1 + $0x160] ss:$8 sps:$4 sm:$0xff]   ;;  %v2642_v52 = vld [vmem:[%s3844_s1 + $0x174] ss:$8 sps:$4 sm:$0xff]   ;;  %v2640_v53 = vld [vmem:[%s3844_s1 + $0x170] ss:$8 sps:$4 sm:$0xff]  }
  0x12   :  { %v2645_v54 = vld [vmem:[%s3844_s1 + $0x184] ss:$8 sps:$4 sm:$0xff]   ;;  %v2643_v55 = vld [vmem:[%s3844_s1 + $0x180] ss:$8 sps:$4 sm:$0xff]   ;;  %v2648_v56 = vld [vmem:[%s3844_s1 + $0x194] ss:$8 sps:$4 sm:$0xff]  }
  0x13   :  { %831 = vmatpush1.bf16.msra.mxu0 %v2585_v9  ;;  %v2646_v57 = vld [vmem:[%s3844_s1 + $0x190] ss:$8 sps:$4 sm:$0xff]   ;;  %v2651_v58 = vld [vmem:[%s3844_s1 + $0x1a4] ss:$8 sps:$4 sm:$0xff]   ;;  %v2649_v59 = vld [vmem:[%s3844_s1 + $0x1a0] ss:$8 sps:$4 sm:$0xff]  }
  0x14   :  { %832 = vmatprep.subr.bf16.mxu0 %v2586_v10  ;;  %v2654_v60 = vld [vmem:[%s3844_s1 + $0x1b4] ss:$8 sps:$4 sm:$0xff]   ;;  %v2652_v61 = vld [vmem:[%s3844_s1 + $0x1b0] ss:$8 sps:$4 sm:$0xff]   ;;  %v2657_v62 = vld [vmem:[%s3844_s1 + $0x1c4] ss:$8 sps:$4 sm:$0xff]  }
  0x15   :  { %v2655_v63 = vld [vmem:[%s3844_s1 + $0x1c0] ss:$8 sps:$4 sm:$0xff]   ;;  %v2660_v0 = vld [vmem:[%s3844_s1 + $0x1d4] ss:$8 sps:$4 sm:$0xff]   ;;  %v2658_v1 = vld [vmem:[%s3844_s1 + $0x1d0] ss:$8 sps:$4 sm:$0xff]  }
  0x16   :  { %v2663_v2 = vld [vmem:[%s3844_s1 + $0x1e4] ss:$8 sps:$4 sm:$0xff]   ;;  %v2661_v3 = vld [vmem:[%s3844_s1 + $0x1e0] ss:$8 sps:$4 sm:$0xff]   ;;  %v2666_v4 = vld [vmem:[%s3844_s1 + $0x1f4] ss:$8 sps:$4 sm:$0xff]  }
  0x17   :  { %833 = vmatpush1.bf16.msra.mxu0 %v2588_v11  ;;  %v2664_v5 = vld [vmem:[%s3844_s1 + $0x1f0] ss:$8 sps:$4 sm:$0xff]   ;;  %v2669_v7 = vld [vmem:[%s3844_s1 + $0x204] ss:$8 sps:$4 sm:$0xff]   ;;  %v2667_v10 = vld [vmem:[%s3844_s1 + $0x200] ss:$8 sps:$4 sm:$0xff]  }
  0x18   :  { %834 = vmatprep.subr.bf16.mxu0 %v2589_v12  ;;  %v28_v6 = vld [vmem:[%s3845_s0 + $0x10] sm:$0xff]  ;;  %v31_v8 = vld [vmem:[%s3845_s0 + $0x28] sm:$0xff] }
  0x19   :  { %v36_v9 = vpack.c.bf16 %v28_v6, %v28_v6  ;;  %v39_v11 = vpack.c.bf16 %v31_v8, %v31_v8  ;;  %v2672_v12 = vld [vmem:[%s3844_s1 + $0x214] ss:$8 sps:$4 sm:$0xff]   ;;  %v2670_v13 = vld [vmem:[%s3844_s1 + $0x210] ss:$8 sps:$4 sm:$0xff]   ;;  %v2675_v14 = vld [vmem:[%s3844_s1 + $0x224] ss:$8 sps:$4 sm:$0xff]  }
  0x1a   :  { %v2685_v35 = vld [vmem:[%s3844_s1 + $0x260] ss:$8 sps:$4 sm:$0xff]   ;;  %v2781_v36 = vld [vmem:[%s3846_s3 + $0x64] ss:$8 sps:$4 sm:$0xff]   ;;  %v33_v8 = vld [vmem:[%s3845_s0 + $0x38] sm:$0xff] }
  0x1b   :  { %835 = vmatpush1.bf16.msra.mxu0 %v2591_v15  ;;  %v2763_v15 = vld [vmem:[%s3846_s3 + $0x4] ss:$8 sps:$4 sm:$0xff]  }
  0x1c   :  { %836 = vmatprep.subr.bf16.mxu0 %v2592_v16  ;;  %v2765_v16 = vld [vmem:[%s3846_s3] ss:$8 sps:$4 sm:$0xff]   ;;  %1194 = vmatprep.subr.bf16.mxu1 %v2763_v15 }
  0x1d   :  { %1195 = vmatpush1.bf16.msra.mxu1 %v2765_v16  ;;  %v30_v6 = vld [vmem:[%s3845_s0 + $0x20] sm:$0xff]  ;;  %v2726_v16 = vld [vmem:[%s3844_s1 + $0x334] ss:$8 sps:$4 sm:$0xff]  }
  0x1e   :  { %v2721_v15 = vld [vmem:[%s3844_s1 + $0x320] ss:$8 sps:$4 sm:$0xff]  }
  0x1f   :  { %837 = vmatpush1.bf16.msra.mxu0 %v2594_v17  ;;  %v2766_v17 = vld [vmem:[%s3846_s3 + $0x14] ss:$8 sps:$4 sm:$0xff]  }
  0x20   :  { %838 = vmatprep.subr.bf16.mxu0 %v2595_v18  ;;  %v2673_v18 = vld [vmem:[%s3844_s1 + $0x220] ss:$8 sps:$4 sm:$0xff]   ;;  %1196 = vmatprep.subr.bf16.mxu1 %v2766_v17  ;;  %v2724_v17 = vld [vmem:[%s3844_s1 + $0x330] ss:$8 sps:$4 sm:$0xff]  }
  0x23   :  { %839 = vmatpush1.bf16.msra.mxu0 %v2597_v19  ;;  %v2768_v19 = vld [vmem:[%s3846_s3 + $0x10] ss:$8 sps:$4 sm:$0xff]  }
  0x24   :  { %840 = vmatprep.subr.bf16.mxu0 %v2598_v20  ;;  %v2769_v20 = vld [vmem:[%s3846_s3 + $0x24] ss:$8 sps:$4 sm:$0xff]   ;;  %1197 = vmatpush1.bf16.msra.mxu1 %v2768_v19  ;;  %v2727_v19 = vld [vmem:[%s3844_s1 + $0x340] ss:$8 sps:$4 sm:$0xff]  }
  0x25   :  { %1198 = vmatprep.subr.bf16.mxu1 %v2769_v20  ;;  %v2732_v20 = vld [vmem:[%s3844_s1 + $0x354] ss:$8 sps:$4 sm:$0xff]  }
  0x27   :  { %841 = vmatpush1.bf16.msra.mxu0 %v2600_v21  ;;  %v2678_v21 = vld [vmem:[%s3844_s1 + $0x234] ss:$8 sps:$4 sm:$0xff]  }
  0x28   :  { %842 = vmatprep.subr.bf16.mxu0 %v2601_v22  ;;  %v2676_v22 = vld [vmem:[%s3844_s1 + $0x230] ss:$8 sps:$4 sm:$0xff]  }
  0x2b   :  { %843 = vmatpush1.bf16.msra.mxu0 %v2603_v23  ;;  %v2771_v23 = vld [vmem:[%s3846_s3 + $0x20] ss:$8 sps:$4 sm:$0xff]  }
  0x2c   :  { %844 = vmatprep.subr.bf16.mxu0 %v2604_v24  ;;  %v2772_v24 = vld [vmem:[%s3846_s3 + $0x34] ss:$8 sps:$4 sm:$0xff]   ;;  %1199 = vmatpush1.bf16.msra.mxu1 %v2771_v23  ;;  %v2733_v23 = vld [vmem:[%s3844_s1 + $0x360] ss:$8 sps:$4 sm:$0xff]  }
  0x2d   :  { %1200 = vmatprep.subr.bf16.mxu1 %v2772_v24  ;;  %v2738_v24 = vld [vmem:[%s3844_s1 + $0x374] ss:$8 sps:$4 sm:$0xff]  }
  0x2f   :  { %845 = vmatpush1.bf16.msra.mxu0 %v2606_v25  ;;  %v2681_v25 = vld [vmem:[%s3844_s1 + $0x244] ss:$8 sps:$4 sm:$0xff]  }
  0x30   :  { %846 = vmatprep.subr.bf16.mxu0 %v2607_v26  ;;  %v2679_v26 = vld [vmem:[%s3844_s1 + $0x240] ss:$8 sps:$4 sm:$0xff]  }
  0x33   :  { %847 = vmatpush1.bf16.msra.mxu0 %v2609_v27  ;;  %v2774_v27 = vld [vmem:[%s3846_s3 + $0x30] ss:$8 sps:$4 sm:$0xff]  }
  0x34   :  { %848 = vmatprep.subr.bf16.mxu0 %v2610_v28  ;;  %v2775_v28 = vld [vmem:[%s3846_s3 + $0x44] ss:$8 sps:$4 sm:$0xff]   ;;  %1201 = vmatpush1.bf16.msra.mxu1 %v2774_v27  ;;  %v2739_v27 = vld [vmem:[%s3844_s1 + $0x380] ss:$8 sps:$4 sm:$0xff]  }
  0x35   :  { %1202 = vmatprep.subr.bf16.mxu1 %v2775_v28  ;;  %v2744_v28 = vld [vmem:[%s3844_s1 + $0x394] ss:$8 sps:$4 sm:$0xff]  }
  0x37   :  { %849 = vmatpush1.bf16.msra.mxu0 %v2612_v29  ;;  %v2684_v29 = vld [vmem:[%s3844_s1 + $0x254] ss:$8 sps:$4 sm:$0xff]  }
  0x38   :  { %850 = vmatprep.subr.bf16.mxu0 %v2613_v30  ;;  %v2682_v30 = vld [vmem:[%s3844_s1 + $0x250] ss:$8 sps:$4 sm:$0xff]  }
  0x3b   :  { %851 = vmatpush1.bf16.msra.mxu0 %v2615_v31  ;;  %v2777_v31 = vld [vmem:[%s3846_s3 + $0x40] ss:$8 sps:$4 sm:$0xff]  }
  0x3c   :  { %852 = vmatprep.subr.bf16.mxu0 %v2616_v32  ;;  %v2778_v32 = vld [vmem:[%s3846_s3 + $0x54] ss:$8 sps:$4 sm:$0xff]   ;;  %1203 = vmatpush1.bf16.msra.mxu1 %v2777_v31  ;;  %v2745_v31 = vld [vmem:[%s3844_s1 + $0x3a0] ss:$8 sps:$4 sm:$0xff]  }
  0x3d   :  { %1204 = vmatprep.subr.bf16.mxu1 %v2778_v32  ;;  %v2750_v32 = vld [vmem:[%s3844_s1 + $0x3b4] ss:$8 sps:$4 sm:$0xff]  }
  0x3f   :  { %853 = vmatpush1.bf16.msra.mxu0 %v2618_v33  ;;  %v2687_v33 = vld [vmem:[%s3844_s1 + $0x264] ss:$8 sps:$4 sm:$0xff]  }
  0x40   :  { %863 = vmatprep.subr.bf16.mxu0 %v2621_v34  ;;  %v2780_v34 = vld [vmem:[%s3846_s3 + $0x50] ss:$8 sps:$4 sm:$0xff]  }
  0x41   :  { %1205 = vmatpush1.bf16.msra.mxu1 %v2780_v34  ;;  %v2753_v34 = vld [vmem:[%s3844_s1 + $0x3c4] ss:$8 sps:$4 sm:$0xff]  }
  0x42   :  { %855 = vmatmul.mubr.bf16.vlgmr.msra.gmra.mrb[0].mxu0 %v34_v37  ;;  %v2690_v37 = vld [vmem:[%s3844_s1 + $0x274] ss:$8 sps:$4 sm:$0xff]   ;;  %1206 = vmatprep.subr.bf16.mxu1 %v2781_v36 }
  0x43   :  { %864 = vmatpush1.bf16.msra.mxu0 %v2619_v38  ;;  %895 = vmatprep.mubr.bf16.mxu0 %v37_v39  ;;  %v2783_v38 = vld [vmem:[%s3846_s3 + $0x60] ss:$8 sps:$4 sm:$0xff]   ;;  %v2688_v39 = vld [vmem:[%s3844_s1 + $0x270] ss:$8 sps:$4 sm:$0xff]   ;;  %v2756_v36 = vld [vmem:[%s3844_s1 + $0x3d4] ss:$8 sps:$4 sm:$0xff]  }
  0x44   :  { %865 = vmatprep.subr.bf16.mxu0 %v2624_v40  ;;  %v2784_v40 = vld [vmem:[%s3846_s3 + $0x74] ss:$8 sps:$4 sm:$0xff]  }
  0x45   :  { %1207 = vmatpush1.bf16.msra.mxu1 %v2783_v38  ;;  %v2759_v38 = vld [vmem:[%s3844_s1 + $0x3e4] ss:$8 sps:$4 sm:$0xff]  }
  0x46   :  { %1208 = vmatprep.subr.bf16.mxu1 %v2784_v40  ;;  %v2762_v40 = vld [vmem:[%s3844_s1 + $0x3f4] ss:$8 sps:$4 sm:$0xff]  }
  0x47   :  { %866 = vmatpush1.bf16.msra.mxu0 %v2622_v41  ;;  %v2693_v41 = vld [vmem:[%s3844_s1 + $0x284] ss:$8 sps:$4 sm:$0xff]  }
  0x48   :  { %867 = vmatprep.subr.bf16.mxu0 %v2627_v42  ;;  %v2786_v42 = vld [vmem:[%s3846_s3 + $0x70] ss:$8 sps:$4 sm:$0xff]  }
  0x49   :  { %1209 = vmatpush1.bf16.msra.mxu1 %v2786_v42  ;;  %v3350_v42 = vld [vmem:[%s3845_s0 + $0x30] sm:$0xff] }
  0x4b   :  { %868 = vmatpush1.bf16.msra.mxu0 %v2625_v43  ;;  %v2691_v43 = vld [vmem:[%s3844_s1 + $0x280] ss:$8 sps:$4 sm:$0xff]  }
  0x4c   :  { %869 = vmatprep.subr.bf16.mxu0 %v2630_v44  ;;  %v2787_v44 = vld [vmem:[%s3846_s3 + $0x84] ss:$8 sps:$4 sm:$0xff]  }
  0x4d   :  { %1210 = vmatprep.subr.bf16.mxu1 %v2787_v44  ;;  %v2805_v44 = vld [vmem:[%s3846_s3 + $0xe4] ss:$8 sps:$4 sm:$0xff]  }
  0x4f   :  { %870 = vmatpush1.bf16.msra.mxu0 %v2628_v45  ;;  %v2696_v45 = vld [vmem:[%s3844_s1 + $0x294] ss:$8 sps:$4 sm:$0xff]  }
  0x50   :  { %871 = vmatprep.subr.bf16.mxu0 %v2633_v46  ;;  %v2789_v46 = vld [vmem:[%s3846_s3 + $0x80] ss:$8 sps:$4 sm:$0xff]  }
  0x51   :  { %1211 = vmatpush1.bf16.msra.mxu1 %v2789_v46  ;;  %v2808_v46 = vld [vmem:[%s3846_s3 + $0xf4] ss:$8 sps:$4 sm:$0xff]  }
  0x53   :  { %872 = vmatpush1.bf16.msra.mxu0 %v2631_v47  ;;  %v2694_v47 = vld [vmem:[%s3844_s1 + $0x290] ss:$8 sps:$4 sm:$0xff]  }
  0x54   :  { %873 = vmatprep.subr.bf16.mxu0 %v2636_v48  ;;  %v2790_v48 = vld [vmem:[%s3846_s3 + $0x94] ss:$8 sps:$4 sm:$0xff]  }
  0x55   :  { %1212 = vmatprep.subr.bf16.mxu1 %v2790_v48  ;;  %v3369_v48 = vld [vmem:[%s3847_s5] sm:$0xff] }
  0x57   :  { %874 = vmatpush1.bf16.msra.mxu0 %v2634_v49  ;;  %v2699_v49 = vld [vmem:[%s3844_s1 + $0x2a4] ss:$8 sps:$4 sm:$0xff]  }
  0x58   :  { %875 = vmatprep.subr.bf16.mxu0 %v2639_v50  ;;  %v2792_v50 = vld [vmem:[%s3846_s3 + $0x90] ss:$8 sps:$4 sm:$0xff]  }
  0x59   :  { %1213 = vmatpush1.bf16.msra.mxu1 %v2792_v50  ;;  %v1242_v50 = vld [vmem:[%s3847_s5 + $0x18] sm:$0xff] }
  0x5b   :  { %876 = vmatpush1.bf16.msra.mxu0 %v2637_v51  ;;  %v2697_v51 = vld [vmem:[%s3844_s1 + $0x2a0] ss:$8 sps:$4 sm:$0xff]  }
  0x5c   :  { %877 = vmatprep.subr.bf16.mxu0 %v2642_v52  ;;  %v2793_v52 = vld [vmem:[%s3846_s3 + $0xa4] ss:$8 sps:$4 sm:$0xff]  }
  0x5d   :  { %1214 = vmatprep.subr.bf16.mxu1 %v2793_v52 }
  0x5f   :  { %878 = vmatpush1.bf16.msra.mxu0 %v2640_v53  ;;  %v2702_v53 = vld [vmem:[%s3844_s1 + $0x2b4] ss:$8 sps:$4 sm:$0xff]  }
  0x60   :  { %879 = vmatprep.subr.bf16.mxu0 %v2645_v54  ;;  %v2795_v54 = vld [vmem:[%s3846_s3 + $0xa0] ss:$8 sps:$4 sm:$0xff]  }
  0x61   :  { %1215 = vmatpush1.bf16.msra.mxu1 %v2795_v54 }
  0x63   :  { %880 = vmatpush1.bf16.msra.mxu0 %v2643_v55  ;;  %v2700_v55 = vld [vmem:[%s3844_s1 + $0x2b0] ss:$8 sps:$4 sm:$0xff]  }
  0x64   :  { %881 = vmatprep.subr.bf16.mxu0 %v2648_v56  ;;  %v2796_v56 = vld [vmem:[%s3846_s3 + $0xb4] ss:$8 sps:$4 sm:$0xff]  }
  0x65   :  { %1216 = vmatprep.subr.bf16.mxu1 %v2796_v56  ;;  %v1250_v56 = vld [vmem:[%s3847_s5 + $0x58] sm:$0xff] }
  0x67   :  { %882 = vmatpush1.bf16.msra.mxu0 %v2646_v57  ;;  %v2705_v57 = vld [vmem:[%s3844_s1 + $0x2c4] ss:$8 sps:$4 sm:$0xff]  }
  0x68   :  { %883 = vmatprep.subr.bf16.mxu0 %v2651_v58  ;;  %v2798_v58 = vld [vmem:[%s3846_s3 + $0xb0] ss:$8 sps:$4 sm:$0xff]  }
  0x69   :  { %1217 = vmatpush1.bf16.msra.mxu1 %v2798_v58 }
  0x6b   :  { %884 = vmatpush1.bf16.msra.mxu0 %v2649_v59  ;;  %v2703_v59 = vld [vmem:[%s3844_s1 + $0x2c0] ss:$8 sps:$4 sm:$0xff]  }
  0x6c   :  { %885 = vmatprep.subr.bf16.mxu0 %v2654_v60  ;;  %v2799_v60 = vld [vmem:[%s3846_s3 + $0xc4] ss:$8 sps:$4 sm:$0xff]  }
  0x6d   :  { %1218 = vmatprep.subr.bf16.mxu1 %v2799_v60  ;;  %v1258_v60 = vld [vmem:[%s3847_s5 + $0x98] sm:$0xff] }
  0x6f   :  { %886 = vmatpush1.bf16.msra.mxu0 %v2652_v61  ;;  %v2708_v61 = vld [vmem:[%s3844_s1 + $0x2d4] ss:$8 sps:$4 sm:$0xff]  }
  0x70   :  { %887 = vmatprep.subr.bf16.mxu0 %v2657_v62  ;;  %v2801_v62 = vld [vmem:[%s3846_s3 + $0xc0] ss:$8 sps:$4 sm:$0xff]  }
  0x71   :  { %1219 = vmatpush1.bf16.msra.mxu1 %v2801_v62 }
  0x73   :  { %888 = vmatpush1.bf16.msra.mxu0 %v2655_v63  ;;  %v2706_v63 = vld [vmem:[%s3844_s1 + $0x2d0] ss:$8 sps:$4 sm:$0xff]  }
  0x74   :  { %889 = vmatprep.subr.bf16.mxu0 %v2660_v0  ;;  %v2802_v0 = vld [vmem:[%s3846_s3 + $0xd4] ss:$8 sps:$4 sm:$0xff]  }
  0x75   :  { %1220 = vmatprep.subr.bf16.mxu1 %v2802_v0  ;;  %v1266_v0 = vld [vmem:[%s3847_s5 + $0xd8] sm:$0xff] }
  0x77   :  { %890 = vmatpush1.bf16.msra.mxu0 %v2658_v1  ;;  %v2711_v1 = vld [vmem:[%s3844_s1 + $0x2e4] ss:$8 sps:$4 sm:$0xff]  }
  0x78   :  { %891 = vmatprep.subr.bf16.mxu0 %v2663_v2  ;;  %v2804_v2 = vld [vmem:[%s3846_s3 + $0xd0] ss:$8 sps:$4 sm:$0xff]  }
  0x79   :  { %1221 = vmatpush1.bf16.msra.mxu1 %v2804_v2 }
  0x7a   :  { %1222 = vmatprep.subr.bf16.mxu1 %v2805_v44 }
  0x7b   :  { %892 = vmatpush1.bf16.msra.mxu0 %v2661_v3  ;;  %v2709_v3 = vld [vmem:[%s3844_s1 + $0x2e0] ss:$8 sps:$4 sm:$0xff]  }
  0x7c   :  { %893 = vmatprep.subr.bf16.mxu0 %v2666_v4  ;;  %v2714_v4 = vld [vmem:[%s3844_s1 + $0x2f4] ss:$8 sps:$4 sm:$0xff]  }
  0x7f   :  { %894 = vmatpush1.bf16.msra.mxu0 %v2664_v5  ;;  %v2712_v5 = vld [vmem:[%s3844_s1 + $0x2f0] ss:$8 sps:$4 sm:$0xff]  }
  0x80   :  { %904 = vmatprep.subr.bf16.mxu0 %v2669_v7  ;;  %v2717_v7 = vld [vmem:[%s3844_s1 + $0x304] ss:$8 sps:$4 sm:$0xff]  }
  0x82   :  { %896 = vmatmul.mubr.bf16.vlgmr.msra.gmra.mrb[0].mxu0 %v36_v9  ;;  %v38_v9 = vpack.c.bf16 %v30_v6, %v30_v6 }
  0x83   :  { %905 = vmatpush1.bf16.msra.mxu0 %v2667_v10  ;;  %936 = vmatprep.mubr.bf16.mxu0 %v39_v11  ;;  %v2715_v10 = vld [vmem:[%s3844_s1 + $0x300] ss:$8 sps:$4 sm:$0xff]   ;;  %v41_v11 = vpack.c.bf16 %v33_v8, %v33_v8  ;;  %v1282_v8 = vld [vmem:[%s3847_s5 + $0x158] sm:$0xff] }
  0x84   :  { %906 = vmatprep.subr.bf16.mxu0 %v2672_v12  ;;  %v2720_v12 = vld [vmem:[%s3844_s1 + $0x314] ss:$8 sps:$4 sm:$0xff]  }
  0x87   :  { %907 = vmatpush1.bf16.msra.mxu0 %v2670_v13  ;;  %v2718_v13 = vld [vmem:[%s3844_s1 + $0x310] ss:$8 sps:$4 sm:$0xff]  }
  0x88   :  { %908 = vmatprep.subr.bf16.mxu0 %v2675_v14  ;;  %v2723_v14 = vld [vmem:[%s3844_s1 + $0x324] ss:$8 sps:$4 sm:$0xff]  }
  0x8b   :  { %909 = vmatpush1.bf16.msra.mxu0 %v2673_v18  ;;  %v2729_v18 = vld [vmem:[%s3844_s1 + $0x344] ss:$8 sps:$4 sm:$0xff]  }
  0x8c   :  { %910 = vmatprep.subr.bf16.mxu0 %v2678_v21  ;;  %v2730_v21 = vld [vmem:[%s3844_s1 + $0x350] ss:$8 sps:$4 sm:$0xff]  }
  0x8f   :  { %911 = vmatpush1.bf16.msra.mxu0 %v2676_v22  ;;  %v2735_v22 = vld [vmem:[%s3844_s1 + $0x364] ss:$8 sps:$4 sm:$0xff]  }
  0x90   :  { %912 = vmatprep.subr.bf16.mxu0 %v2681_v25  ;;  %v2736_v25 = vld [vmem:[%s3844_s1 + $0x370] ss:$8 sps:$4 sm:$0xff]  }
  0x93   :  { %913 = vmatpush1.bf16.msra.mxu0 %v2679_v26  ;;  %v2741_v26 = vld [vmem:[%s3844_s1 + $0x384] ss:$8 sps:$4 sm:$0xff]  }
  0x94   :  { %914 = vmatprep.subr.bf16.mxu0 %v2684_v29  ;;  %v2742_v29 = vld [vmem:[%s3844_s1 + $0x390] ss:$8 sps:$4 sm:$0xff]  }
  0x97   :  { %915 = vmatpush1.bf16.msra.mxu0 %v2682_v30  ;;  %v2747_v30 = vld [vmem:[%s3844_s1 + $0x3a4] ss:$8 sps:$4 sm:$0xff]  }
  0x98   :  { %916 = vmatprep.subr.bf16.mxu0 %v2687_v33  ;;  %v2748_v33 = vld [vmem:[%s3844_s1 + $0x3b0] ss:$8 sps:$4 sm:$0xff]  }
  0x9b   :  { %917 = vmatpush1.bf16.msra.mxu0 %v2685_v35  ;;  %v2751_v35 = vld [vmem:[%s3844_s1 + $0x3c0] ss:$8 sps:$4 sm:$0xff]  }
  0x9c   :  { %918 = vmatprep.subr.bf16.mxu0 %v2690_v37  ;;  %v2754_v37 = vld [vmem:[%s3844_s1 + $0x3d0] ss:$8 sps:$4 sm:$0xff]  }
  0x9f   :  { %919 = vmatpush1.bf16.msra.mxu0 %v2688_v39  ;;  %v2757_v39 = vld [vmem:[%s3844_s1 + $0x3e0] ss:$8 sps:$4 sm:$0xff]  }
  0xa0   :  { %920 = vmatprep.subr.bf16.mxu0 %v2693_v41  ;;  %v2760_v41 = vld [vmem:[%s3844_s1 + $0x3f0] ss:$8 sps:$4 sm:$0xff]  }
  0xa3   :  { %921 = vmatpush1.bf16.msra.mxu0 %v2691_v43  ;;  %v40_v43 = vpack.c.bf16 %v3350_v42, %v3350_v42 }
  0xa4   :  { %922 = vmatprep.subr.bf16.mxu0 %v2696_v45  ;;  %v2807_v45 = vld [vmem:[%s3846_s3 + $0xe0] ss:$8 sps:$4 sm:$0xff]  }
  0xa5   :  { %1223 = vmatpush1.bf16.msra.mxu1 %v2807_v45  ;;  %v172_v45 = vlaneseq }
  0xa6   :  { %1224 = vmatprep.subr.bf16.mxu1 %v2808_v46 }
  0xa7   :  { %923 = vmatpush1.bf16.msra.mxu0 %v2694_v47  ;;  %v2810_v47 = vld [vmem:[%s3846_s3 + $0xf0] ss:$8 sps:$4 sm:$0xff]   ;;  %v3464_v46 = vshrl.u32 %v172_v45, 7 }
  0xa8   :  { %924 = vmatprep.subr.bf16.mxu0 %v2699_v49  ;;  %v3374_v49 = vld [vmem:[%s3847_s5 + $0x20] sm:$0xff] }
  0xa9   :  { %1225 = vmatpush1.bf16.msra.mxu1 %v2810_v47  ;;  %v2428_v52 = vcombine.high %v3369_v48, %v3374_v49  ;;  %v3467_v47 = vsub.s32 0, %v3464_v46  ;;  %vm2226_vm0 = vcmp.lt.s32.totalorder %v3464_v46, 2 }
  0xab   :  { %925 = vmatpush1.bf16.msra.mxu0 %v2697_v51  ;;  %v2427_v51 = vcombine.low %v3369_v48, %v3374_v49  ;;  %2049 = vmatprep.subr.bf16.mxu1 %v2428_v52  ;;  %v3473_v52 = vsub.s32 1, %v3464_v46  ;;  %v1271_v48 = vld [vmem:[%s3847_s5 + $0x100] sm:$0xff] }
  0xac   :  { %926 = vmatprep.subr.bf16.mxu0 %v2702_v53  ;;  %v1246_v53 = vld [vmem:[%s3847_s5 + $0x38] sm:$0xff]  ;;  %v1275_v49 = vld [vmem:[%s3847_s5 + $0x120] sm:$0xff] }
  0xad   :  { %v2433_v54 = vcombine.low %v1242_v50, %v1246_v53 }
  0xaf   :  { %927 = vmatpush1.bf16.msra.mxu0 %v2700_v55  ;;  %v2434_v55 = vcombine.high %v1242_v50, %v1246_v53  ;;  %v170_v50 = vld [vmem:[%s3848_s2] sm:$0x3] }
  0xb0   :  { %928 = vmatprep.subr.bf16.mxu0 %v2705_v57  ;;  %v1254_v57 = vld [vmem:[%s3847_s5 + $0x78] sm:$0xff]  ;;  %v175_v53 = vrot.slane %v170_v50, %v3467_v47 }
  0xb1   :  { %v2441_v58 = vcombine.low %v1250_v56, %v1254_v57 }
  0xb3   :  { %929 = vmatpush1.bf16.msra.mxu0 %v2703_v59  ;;  %v2442_v59 = vcombine.high %v1250_v56, %v1254_v57 }
  0xb4   :  { %930 = vmatprep.subr.bf16.mxu0 %v2708_v61  ;;  %v1262_v61 = vld [vmem:[%s3847_s5 + $0xb8] sm:$0xff] }
  0xb5   :  { %v2449_v62 = vcombine.low %v1258_v60, %v1262_v61 }
  0xb7   :  { %931 = vmatpush1.bf16.msra.mxu0 %v2706_v63  ;;  %v2450_v63 = vcombine.high %v1258_v60, %v1262_v61 }
  0xb8   :  { %932 = vmatprep.subr.bf16.mxu0 %v2711_v1  ;;  %v1270_v1 = vld [vmem:[%s3847_s5 + $0xf8] sm:$0xff] }
  0xb9   :  { %v2457_v2 = vcombine.low %v1266_v0, %v1270_v1 }
  0xbb   :  { %933 = vmatpush1.bf16.msra.mxu0 %v2709_v3  ;;  %v2458_v3 = vcombine.high %v1266_v0, %v1270_v1  ;;  %v1251_v0 = vld [vmem:[%s3847_s5 + $0x60] sm:$0xff] }
  0xbc   :  { %934 = vmatprep.subr.bf16.mxu0 %v2714_v4  ;;  %v1274_v4 = vld [vmem:[%s3847_s5 + $0x118] sm:$0xff] }
  0xbf   :  { %935 = vmatpush1.bf16.msra.mxu0 %v2712_v5  ;;  %v1278_v5 = vld [vmem:[%s3847_s5 + $0x138] sm:$0xff] }
  0xc0   :  { %945 = vmatprep.subr.bf16.mxu0 %v2717_v7  ;;  %v2465_v6 = vcombine.low %v1274_v4, %v1278_v5  ;;  %v2466_v7 = vcombine.high %v1274_v4, %v1278_v5  ;;  %v1255_v4 = vld [vmem:[%s3847_s5 + $0x80] sm:$0xff] }
  0xc1   :  { %v1259_v5 = vld [vmem:[%s3847_s5 + $0xa0] sm:$0xff] }
  0xc2   :  { %937 = vmatmul.mubr.bf16.vlgmr.msra.gmra.mrb[0].mxu0 %v38_v9  ;;  %v1286_v9 = vld [vmem:[%s3847_s5 + $0x178] sm:$0xff] }
  0xc3   :  { %946 = vmatpush1.bf16.msra.mxu0 %v2715_v10  ;;  %977 = vmatprep.mubr.bf16.mxu0 %v41_v11  ;;  %v2473_v10 = vcombine.low %v1282_v8, %v1286_v9  ;;  %v2474_v11 = vcombine.high %v1282_v8, %v1286_v9  ;;  %v1263_v8 = vld [vmem:[%s3847_s5 + $0xc0] sm:$0xff] }
  0xc4   :  { %947 = vmatprep.subr.bf16.mxu0 %v2720_v12  ;;  %v1290_v12 = vld [vmem:[%s3847_s5 + $0x198] sm:$0xff]  ;;  %v1267_v9 = vld [vmem:[%s3847_s5 + $0xe0] sm:$0xff] }
  0xc7   :  { %948 = vmatpush1.bf16.msra.mxu0 %v2718_v13  ;;  %v1294_v13 = vld [vmem:[%s3847_s5 + $0x1b8] sm:$0xff] }
  0xc8   :  { %949 = vmatprep.subr.bf16.mxu0 %v2723_v14  ;;  %v2481_v14 = vcombine.low %v1290_v12, %v1294_v13 }
  0xcb   :  { %950 = vmatpush1.bf16.msra.mxu0 %v2721_v15  ;;  %v2482_v15 = vcombine.high %v1290_v12, %v1294_v13  ;;  %v2460_v12 = vcombine.high %v1271_v48, %v1275_v49  ;;  %v1279_v13 = vld [vmem:[%s3847_s5 + $0x140] sm:$0xff] }
  0xcc   :  { %951 = vmatprep.subr.bf16.mxu0 %v2726_v16  ;;  %v1298_v16 = vld [vmem:[%s3847_s5 + $0x1d8] sm:$0xff] }
  0xcf   :  { %952 = vmatpush1.bf16.msra.mxu0 %v2724_v17  ;;  %v1302_v17 = vld [vmem:[%s3847_s5 + $0x1f8] sm:$0xff] }
  0xd0   :  { %953 = vmatprep.subr.bf16.mxu0 %v2729_v18  ;;  %v2489_v18 = vcombine.low %v1298_v16, %v1302_v17 }
  0xd3   :  { %954 = vmatpush1.bf16.msra.mxu0 %v2727_v19  ;;  %v2490_v19 = vcombine.high %v1298_v16, %v1302_v17  ;;  %v1287_v17 = vld [vmem:[%s3847_s5 + $0x180] sm:$0xff] }
  0xd4   :  { %955 = vmatprep.subr.bf16.mxu0 %v2732_v20  ;;  %v1306_v20 = vld [vmem:[%s3847_s5 + $0x218] sm:$0xff] }
  0xd7   :  { %956 = vmatpush1.bf16.msra.mxu0 %v2730_v21  ;;  %v1310_v21 = vld [vmem:[%s3847_s5 + $0x238] sm:$0xff] }
  0xd8   :  { %957 = vmatprep.subr.bf16.mxu0 %v2735_v22  ;;  %v2497_v22 = vcombine.low %v1306_v20, %v1310_v21 }
  0xdb   :  { %958 = vmatpush1.bf16.msra.mxu0 %v2733_v23  ;;  %v2498_v23 = vcombine.high %v1306_v20, %v1310_v21  ;;  %v1295_v21 = vld [vmem:[%s3847_s5 + $0x1c0] sm:$0xff] }
  0xdc   :  { %959 = vmatprep.subr.bf16.mxu0 %v2738_v24  ;;  %v1314_v24 = vld [vmem:[%s3847_s5 + $0x258] sm:$0xff] }
  0xdf   :  { %960 = vmatpush1.bf16.msra.mxu0 %v2736_v25  ;;  %v1318_v25 = vld [vmem:[%s3847_s5 + $0x278] sm:$0xff] }
  0xe0   :  { %961 = vmatprep.subr.bf16.mxu0 %v2741_v26  ;;  %v2505_v26 = vcombine.low %v1314_v24, %v1318_v25 }
  0xe3   :  { %962 = vmatpush1.bf16.msra.mxu0 %v2739_v27  ;;  %v2506_v27 = vcombine.high %v1314_v24, %v1318_v25  ;;  %v1303_v25 = vld [vmem:[%s3847_s5 + $0x200] sm:$0xff] }
  0xe4   :  { %963 = vmatprep.subr.bf16.mxu0 %v2744_v28  ;;  %v1322_v28 = vld [vmem:[%s3847_s5 + $0x298] sm:$0xff] }
  0xe7   :  { %964 = vmatpush1.bf16.msra.mxu0 %v2742_v29  ;;  %v1326_v29 = vld [vmem:[%s3847_s5 + $0x2b8] sm:$0xff] }
  0xe8   :  { %965 = vmatprep.subr.bf16.mxu0 %v2747_v30  ;;  %v2513_v30 = vcombine.low %v1322_v28, %v1326_v29 }
  0xeb   :  { %966 = vmatpush1.bf16.msra.mxu0 %v2745_v31  ;;  %v2514_v31 = vcombine.high %v1322_v28, %v1326_v29  ;;  %v1311_v29 = vld [vmem:[%s3847_s5 + $0x240] sm:$0xff] }
  0xec   :  { %967 = vmatprep.subr.bf16.mxu0 %v2750_v32  ;;  %v1330_v32 = vld [vmem:[%s3847_s5 + $0x2d8] sm:$0xff] }
  0xef   :  { %968 = vmatpush1.bf16.msra.mxu0 %v2748_v33  ;;  %v1334_v33 = vld [vmem:[%s3847_s5 + $0x2f8] sm:$0xff] }
  0xf0   :  { %969 = vmatprep.subr.bf16.mxu0 %v2753_v34  ;;  %v2521_v34 = vcombine.low %v1330_v32, %v1334_v33 }
  0xf3   :  { %970 = vmatpush1.bf16.msra.mxu0 %v2751_v35  ;;  %v2522_v35 = vcombine.high %v1330_v32, %v1334_v33  ;;  %v1319_v33 = vld [vmem:[%s3847_s5 + $0x280] sm:$0xff] }
  0xf4   :  { %971 = vmatprep.subr.bf16.mxu0 %v2756_v36  ;;  %v1338_v36 = vld [vmem:[%s3847_s5 + $0x318] sm:$0xff] }
  0xf7   :  { %972 = vmatpush1.bf16.msra.mxu0 %v2754_v37  ;;  %v1342_v37 = vld [vmem:[%s3847_s5 + $0x338] sm:$0xff] }
  0xf8   :  { %973 = vmatprep.subr.bf16.mxu0 %v2759_v38  ;;  %v2529_v38 = vcombine.low %v1338_v36, %v1342_v37 }
  0xfb   :  { %974 = vmatpush1.bf16.msra.mxu0 %v2757_v39  ;;  %v2530_v39 = vcombine.high %v1338_v36, %v1342_v37  ;;  %v1327_v37 = vld [vmem:[%s3847_s5 + $0x2c0] sm:$0xff] }
  0xfc   :  { %975 = vmatprep.subr.bf16.mxu0 %v2762_v40  ;;  %v1346_v40 = vld [vmem:[%s3847_s5 + $0x358] sm:$0xff] }
  0xff   :  { %976 = vmatpush1.bf16.msra.mxu0 %v2760_v41  ;;  %v1350_v41 = vld [vmem:[%s3847_s5 + $0x378] sm:$0xff] }
 0x100   :  { %2172 = vmatprep.subr.bf16.mxu0 %v2434_v55  ;;  %v2538_v44 = vcombine.high %v1346_v40, %v1350_v41 }
 0x102   :  { %978 = vmatmul.mubr.bf16.vlgmr.msra.gmra.mrb[0].mxu0 %v40_v43  ;;  %v2537_v43 = vcombine.low %v1346_v40, %v1350_v41  ;;  %v1335_v41 = vld [vmem:[%s3847_s5 + $0x300] sm:$0xff] }
 0x103   :  { %2173 = vmatpush1.bf16.msra.mxu0 %v2433_v54  ;;  %v179_v54 = vrot.slane %v170_v50, %v3473_v52  ;;  %v1343_v50 = vld [vmem:[%s3847_s5 + $0x340] sm:$0xff] }
 0x104   :  { %2174 = vmatprep.subr.bf16.mxu0 %v2442_v59 }
 0x107   :  { %2175 = vmatpush1.bf16.msra.mxu0 %v2441_v58 }
 0x108   :  { %2176 = vmatprep.subr.bf16.mxu0 %v2450_v63  ;;  %v1247_v63 = vld [vmem:[%s3847_s5 + $0x40] sm:$0xff] }
 0x10b   :  { %2177 = vmatpush1.bf16.msra.mxu0 %v2449_v62 }
 0x10c   :  { %2178 = vmatprep.subr.bf16.mxu0 %v2458_v3  ;;  %v2436_v3 = vcombine.high %v1247_v63, %v1251_v0 }
 0x10f   :  { %2179 = vmatpush1.bf16.msra.mxu0 %v2457_v2 }
 0x110   :  { %2180 = vmatprep.subr.bf16.mxu0 %v2466_v7  ;;  %v2444_v7 = vcombine.high %v1255_v4, %v1259_v5 }
 0x113   :  { %2181 = vmatpush1.bf16.msra.mxu0 %v2465_v6  ;;  %v2435_v6 = vcombine.low %v1247_v63, %v1251_v0 }
 0x114   :  { %2182 = vmatprep.subr.bf16.mxu0 %v2474_v11  ;;  %v2452_v11 = vcombine.high %v1263_v8, %v1267_v9 }
 0x117   :  { %2183 = vmatpush1.bf16.msra.mxu0 %v2473_v10  ;;  %v2443_v10 = vcombine.low %v1255_v4, %v1259_v5  ;;  %v1362_v4 = vld [vmem:[%s3847_s5 + $0x3d8] sm:$0xff] }
 0x118   :  { %2184 = vmatprep.subr.bf16.mxu0 %v2482_v15  ;;  %v2459_v15 = vcombine.low %v1271_v48, %v1275_v49  ;;  %v1366_v5 = vld [vmem:[%s3847_s5 + $0x3f8] sm:$0xff]  ;;  %v1022_v49 = vld [vmem:[%s3849_s4] sm:$0x3] }
 0x11b   :  { %2185 = vmatpush1.bf16.msra.mxu0 %v2481_v14  ;;  %v1283_v14 = vld [vmem:[%s3847_s5 + $0x160] sm:$0xff] }
 0x11c   :  { %2186 = vmatprep.subr.bf16.mxu0 %v2490_v19  ;;  %v2468_v16 = vcombine.high %v1279_v13, %v1283_v14  ;;  %v2467_v19 = vcombine.low %v1279_v13, %v1283_v14 }
 0x11f   :  { %2187 = vmatpush1.bf16.msra.mxu0 %v2489_v18  ;;  %v1291_v18 = vld [vmem:[%s3847_s5 + $0x1a0] sm:$0xff] }
 0x120   :  { %2188 = vmatprep.subr.bf16.mxu0 %v2498_v23  ;;  %v2476_v20 = vcombine.high %v1287_v17, %v1291_v18  ;;  %v2475_v23 = vcombine.low %v1287_v17, %v1291_v18 }
 0x123   :  { %2189 = vmatpush1.bf16.msra.mxu0 %v2497_v22  ;;  %v1299_v22 = vld [vmem:[%s3847_s5 + $0x1e0] sm:$0xff] }
 0x124   :  { %2190 = vmatprep.subr.bf16.mxu0 %v2506_v27  ;;  %v2484_v24 = vcombine.high %v1295_v21, %v1299_v22  ;;  %v2483_v27 = vcombine.low %v1295_v21, %v1299_v22  ;;  %v1248_v21 = vld [vmem:[%s3847_s5 + $0x48] sm:$0xff] }
 0x125   :  { %v1252_v22 = vld [vmem:[%s3847_s5 + $0x68] sm:$0xff] }
 0x127   :  { %2191 = vmatpush1.bf16.msra.mxu0 %v2505_v26  ;;  %v1307_v26 = vld [vmem:[%s3847_s5 + $0x220] sm:$0xff] }
 0x128   :  { %2192 = vmatprep.subr.bf16.mxu0 %v2514_v31  ;;  %v2492_v28 = vcombine.high %v1303_v25, %v1307_v26  ;;  %v2491_v31 = vcombine.low %v1303_v25, %v1307_v26  ;;  %v2438_v25 = vcombine.high %v1248_v21, %v1252_v22  ;;  %v1256_v26 = vld [vmem:[%s3847_s5 + $0x88] sm:$0xff] }
 0x12b   :  { %2193 = vmatpush1.bf16.msra.mxu0 %v2513_v30  ;;  %v1315_v30 = vld [vmem:[%s3847_s5 + $0x260] sm:$0xff] }
 0x12c   :  { %2194 = vmatprep.subr.bf16.mxu0 %v2522_v35  ;;  %v2500_v32 = vcombine.high %v1311_v29, %v1315_v30  ;;  %v2499_v35 = vcombine.low %v1311_v29, %v1315_v30  ;;  %v1264_v30 = vld [vmem:[%s3847_s5 + $0xc8] sm:$0xff] }
 0x12f   :  { %2195 = vmatpush1.bf16.msra.mxu0 %v2521_v34  ;;  %v1323_v34 = vld [vmem:[%s3847_s5 + $0x2a0] sm:$0xff] }
 0x130   :  { %2196 = vmatprep.subr.bf16.mxu0 %v2530_v39  ;;  %v2508_v36 = vcombine.high %v1319_v33, %v1323_v34  ;;  %v2507_v39 = vcombine.low %v1319_v33, %v1323_v34  ;;  %v1272_v34 = vld [vmem:[%s3847_s5 + $0x108] sm:$0xff] }
 0x133   :  { %2197 = vmatpush1.bf16.msra.mxu0 %v2529_v38  ;;  %v1331_v38 = vld [vmem:[%s3847_s5 + $0x2e0] sm:$0xff] }
 0x134   :  { %2198 = vmatprep.subr.bf16.mxu0 %v2538_v44  ;;  %v2516_v40 = vcombine.high %v1327_v37, %v1331_v38  ;;  %v2515_v44 = vcombine.low %v1327_v37, %v1331_v38  ;;  %v1280_v38 = vld [vmem:[%s3847_s5 + $0x148] sm:$0xff] }
 0x137   :  { %2199 = vmatpush1.bf16.msra.mxu0 %v2537_v43  ;;  %v1339_v43 = vld [vmem:[%s3847_s5 + $0x320] sm:$0xff] }
 0x138   :  { %v2524_v45 = vcombine.high %v1335_v41, %v1339_v43 }
 0x1d5   :  { %v979_v55 = vpop.f32.mrb[0].mxu0 }
 0x1d6   :  { %v2555_v56 = vadd.f32 %v979_v55, %v175_v53  ;;  %v981_v57 = vpop.f32.mrb[1].mxu0  ;;  %v1347_v53 = vld [vmem:[%s3847_s5 + $0x360] sm:$0xff] }
 0x1d7   :  { %v2556_v58 = vadd.f32 %v981_v57, %v179_v54  ;;  %v983_v59 = vpop.f32.mrb[2].mxu0  ;;  %v2523_v54 = vcombine.low %v1335_v41, %v1339_v43  ;;  %v2532_v55 = vcombine.high %v1343_v50, %v1347_v53  ;;  %v1351_v57 = vld [vmem:[%s3847_s5 + $0x380] sm:$0xff]  ;;  %v1288_v43 = vld [vmem:[%s3847_s5 + $0x188] sm:$0xff] }
 0x1d8   :  { %v986_v60 = vmax.f32 %v2555_v56, 0.0  ;;  %v984_v61 = vpop.f32.mrb[3].mxu0  ;;  %v2531_v56 = vcombine.low %v1343_v50, %v1347_v53  ;;  %v1296_v53 = vld [vmem:[%s3847_s5 + $0x1c8] sm:$0xff] }
 0x1d9   :  { %v987_v62 = vmax.f32 %v2556_v58, 0.0  ;;  %v1355_v58 = vld [vmem:[%s3847_s5 + $0x3a0] sm:$0xff]  ;;  %v1358_v61 = vld [vmem:[%s3847_s5 + $0x3b8] sm:$0xff] }
 0x1da   :  { %v988_v2 = vpack.c.bf16 %v986_v60, %v986_v60  ;;  %v2540_v59 = vcombine.high %v1351_v57, %v1355_v58  ;;  %v1354_v60 = vld [vmem:[%s3847_s5 + $0x398] sm:$0xff] }
 0x1db   :  { %v989_v1 = vpack.c.bf16 %v987_v62, %v987_v62  ;;  %v2539_v62 = vcombine.low %v1351_v57, %v1355_v58  ;;  %v2546_v63 = vcombine.high %v1354_v60, %v1358_v61  ;;  %v2545_v0 = vcombine.low %v1354_v60, %v1358_v61  ;;  %v1304_v57 = vld [vmem:[%s3847_s5 + $0x208] sm:$0xff] }
 0x1dc   :  { %v1308_v58 = vld [vmem:[%s3847_s5 + $0x228] sm:$0xff] }
 0x1dd   :  { %1226 = vmatprep.mubr.bf16.mxu1 %v989_v1  ;;  %2200 = vmatprep.subr.bf16.mxu0 %v2546_v63  ;;  %v1359_v1 = vld [vmem:[%s3847_s5 + $0x3c0] sm:$0xff]  ;;  %v2494_v60 = vcombine.high %v1304_v57, %v1308_v58  ;;  %v1312_v61 = vld [vmem:[%s3847_s5 + $0x248] sm:$0xff]  ;;  %v2493_v63 = vcombine.low %v1304_v57, %v1308_v58  ;;  %v1297_v58 = vld [vmem:[%s3847_s5 + $0x1d0] sm:$0xff] }
 0x1de   :  { %1227 = vmatmul.mubr.bf16.vlgmr.msra.gmra.mrb[0].mxu1 %v988_v2  ;;  %v1363_v2 = vld [vmem:[%s3847_s5 + $0x3e0] sm:$0xff]  ;;  %2201 = vmatpush1.bf16.msra.mxu0 %v2545_v0 }
 0x1df   :  { %2050 = vmatpush1.bf16.msra.mxu1 %v2427_v51  ;;  %v2451_v51 = vcombine.low %v1263_v8, %v1267_v9  ;;  %v2553_v8 = vcombine.low %v1362_v4, %v1366_v5  ;;  %v1240_v9 = vld [vmem:[%s3847_s5 + $0x8] sm:$0xff] }
 0x1e0   :  { %2051 = vmatprep.subr.bf16.mxu1 %v2436_v3  ;;  %v2548_v3 = vcombine.high %v1359_v1, %v1363_v2 }
 0x1e3   :  { %2052 = vmatpush1.bf16.msra.mxu1 %v2435_v6  ;;  %v2547_v6 = vcombine.low %v1359_v1, %v1363_v2  ;;  %v1320_v1 = vld [vmem:[%s3847_s5 + $0x288] sm:$0xff] }
 0x1e4   :  { %2053 = vmatprep.subr.bf16.mxu1 %v2444_v7  ;;  %v2554_v7 = vcombine.high %v1362_v4, %v1366_v5  ;;  %v1324_v2 = vld [vmem:[%s3847_s5 + $0x2a8] sm:$0xff] }
 0x1e5   :  { %v2510_v4 = vcombine.high %v1320_v1, %v1324_v2  ;;  %v1328_v5 = vld [vmem:[%s3847_s5 + $0x2c8] sm:$0xff] }
 0x1e6   :  { %2202 = vmatprep.subr.bf16.mxu0 %v2554_v7  ;;  %v2509_v7 = vcombine.low %v1320_v1, %v1324_v2  ;;  %v1313_v2 = vld [vmem:[%s3847_s5 + $0x250] sm:$0xff] }
 0x1e7   :  { %2054 = vmatpush1.bf16.msra.mxu1 %v2443_v10  ;;  %v1244_v10 = vld [vmem:[%s3847_s5 + $0x28] sm:$0xff]  ;;  %2203 = vmatpush1.bf16.msra.mxu0 %v2553_v8 }
 0x1e8   :  { %2055 = vmatprep.subr.bf16.mxu1 %v2452_v11  ;;  %v2430_v11 = vcombine.high %v1240_v9, %v1244_v10  ;;  %v2429_v48 = vcombine.low %v1240_v9, %v1244_v10  ;;  %v1336_v9 = vld [vmem:[%s3847_s5 + $0x308] sm:$0xff] }
 0x1e9   :  { %v1340_v10 = vld [vmem:[%s3847_s5 + $0x328] sm:$0xff] }
 0x1eb   :  { %2056 = vmatpush1.bf16.msra.mxu1 %v2451_v51  ;;  %v1027_v51 = vrot.slane %v1022_v49, %v3467_v47 }
 0x1ec   :  { %2057 = vmatprep.subr.bf16.mxu1 %v2460_v12  ;;  %v1031_v12 = vrot.slane %v1022_v49, %v3473_v52  ;;  %v1344_v49 = vld [vmem:[%s3847_s5 + $0x348] sm:$0xff] }
 0x1ef   :  { %2058 = vmatpush1.bf16.msra.mxu1 %v2459_v15 }
 0x1f0   :  { %2059 = vmatprep.subr.bf16.mxu1 %v2468_v16 }
 0x1f3   :  { %2060 = vmatpush1.bf16.msra.mxu1 %v2467_v19 }
 0x1f4   :  { %2061 = vmatprep.subr.bf16.mxu1 %v2476_v20 }
 0x1f7   :  { %2062 = vmatpush1.bf16.msra.mxu1 %v2475_v23 }
 0x1f8   :  { %2063 = vmatprep.subr.bf16.mxu1 %v2484_v24 }
 0x1fb   :  { %2064 = vmatpush1.bf16.msra.mxu1 %v2483_v27  ;;  %v1260_v27 = vld [vmem:[%s3847_s5 + $0xa8] sm:$0xff] }
 0x1fc   :  { %2065 = vmatprep.subr.bf16.mxu1 %v2492_v28  ;;  %v2437_v28 = vcombine.low %v1248_v21, %v1252_v22  ;;  %v2446_v29 = vcombine.high %v1256_v26, %v1260_v27  ;;  %v1241_v22 = vld [vmem:[%s3847_s5 + $0x10] sm:$0xff] }
 0x1ff   :  { %2066 = vmatpush1.bf16.msra.mxu1 %v2491_v31  ;;  %v1268_v31 = vld [vmem:[%s3847_s5 + $0xe8] sm:$0xff] }
 0x200   :  { %2067 = vmatprep.subr.bf16.mxu1 %v2500_v32  ;;  %v2445_v32 = vcombine.low %v1256_v26, %v1260_v27  ;;  %v2454_v33 = vcombine.high %v1264_v30, %v1268_v31 }
 0x203   :  { %2068 = vmatpush1.bf16.msra.mxu1 %v2499_v35  ;;  %v1276_v35 = vld [vmem:[%s3847_s5 + $0x128] sm:$0xff] }
 0x204   :  { %2069 = vmatprep.subr.bf16.mxu1 %v2508_v36  ;;  %v2453_v36 = vcombine.low %v1264_v30, %v1268_v31  ;;  %v2462_v37 = vcombine.high %v1272_v34, %v1276_v35 }
 0x207   :  { %2070 = vmatpush1.bf16.msra.mxu1 %v2507_v39  ;;  %v1284_v39 = vld [vmem:[%s3847_s5 + $0x168] sm:$0xff] }
 0x208   :  { %2071 = vmatprep.subr.bf16.mxu1 %v2516_v40  ;;  %v2461_v40 = vcombine.low %v1272_v34, %v1276_v35  ;;  %v2470_v41 = vcombine.high %v1280_v38, %v1284_v39 }
 0x20b   :  { %2072 = vmatpush1.bf16.msra.mxu1 %v2515_v44  ;;  %v1292_v44 = vld [vmem:[%s3847_s5 + $0x1a8] sm:$0xff] }
 0x20c   :  { %2073 = vmatprep.subr.bf16.mxu1 %v2524_v45  ;;  %v2469_v45 = vcombine.low %v1280_v38, %v1284_v39  ;;  %v2478_v50 = vcombine.high %v1288_v43, %v1292_v44 }
 0x20f   :  { %2074 = vmatpush1.bf16.msra.mxu1 %v2523_v54  ;;  %v1300_v54 = vld [vmem:[%s3847_s5 + $0x1e8] sm:$0xff] }
 0x210   :  { %2075 = vmatprep.subr.bf16.mxu1 %v2532_v55  ;;  %v2477_v55 = vcombine.low %v1288_v43, %v1292_v44  ;;  %v1281_v44 = vld [vmem:[%s3847_s5 + $0x150] sm:$0xff] }
 0x213   :  { %2076 = vmatpush1.bf16.msra.mxu1 %v2531_v56  ;;  %v2486_v56 = vcombine.high %v1296_v53, %v1300_v54 }
 0x214   :  { %2077 = vmatprep.subr.bf16.mxu1 %v2540_v59  ;;  %v2485_v59 = vcombine.low %v1296_v53, %v1300_v54  ;;  %v1289_v54 = vld [vmem:[%s3847_s5 + $0x190] sm:$0xff] }
 0x217   :  { %2078 = vmatpush1.bf16.msra.mxu1 %v2539_v62  ;;  %v1316_v62 = vld [vmem:[%s3847_s5 + $0x268] sm:$0xff] }
 0x218   :  { %2079 = vmatprep.subr.bf16.mxu1 %v2548_v3  ;;  %v2502_v0 = vcombine.high %v1312_v61, %v1316_v62  ;;  %v2501_v3 = vcombine.low %v1312_v61, %v1316_v62  ;;  %v1305_v62 = vld [vmem:[%s3847_s5 + $0x210] sm:$0xff] }
 0x21b   :  { %2080 = vmatpush1.bf16.msra.mxu1 %v2547_v6  ;;  %v1332_v6 = vld [vmem:[%s3847_s5 + $0x2e8] sm:$0xff] }
 0x21c   :  { %2090 = vmatprep.subr.bf16.mxu1 %v2430_v11  ;;  %v2518_v8 = vcombine.high %v1328_v5, %v1332_v6  ;;  %v2517_v11 = vcombine.low %v1328_v5, %v1332_v6  ;;  %v1321_v6 = vld [vmem:[%s3847_s5 + $0x290] sm:$0xff] }
 0x2b1   :  { %v1228_v13 = vpop.f32.mrb[0].mxu1 }
 0x2b2   :  { %v1229_v14 = vadd.f32 %v1228_v13, %v1027_v51  ;;  %v1230_v15 = vpop.f32.mrb[1].mxu1  ;;  %v1348_v51 = vld [vmem:[%s3847_s5 + $0x368] sm:$0xff] }
 0x2b3   :  { %v1231_v16 = vadd.f32 %v1230_v15, %v1031_v12  ;;  %v1232_v17 = vpop.f32.mrb[2].mxu1  ;;  %v2525_v12 = vcombine.low %v1336_v9, %v1340_v10  ;;  %v2534_v13 = vcombine.high %v1344_v49, %v1348_v51  ;;  %v1356_v15 = vld [vmem:[%s3847_s5 + $0x3a8] sm:$0xff] }
 0x2b4   :  { %v1235_v18 = vmax.f32 %v1229_v14, 0.0  ;;  %v1233_v19 = vpop.f32.mrb[3].mxu1  ;;  %v1352_v14 = vld [vmem:[%s3847_s5 + $0x388] sm:$0xff] }
 0x2b5   :  { %v1236_v20 = vmax.f32 %v1231_v16, 0.0  ;;  %v2533_v16 = vcombine.low %v1344_v49, %v1348_v51  ;;  %v2542_v17 = vcombine.high %v1352_v14, %v1356_v15  ;;  %v1364_v19 = vld [vmem:[%s3847_s5 + $0x3e8] sm:$0xff]  ;;  %v1337_v51 = vld [vmem:[%s3847_s5 + $0x310] sm:$0xff] }
 0x2b6   :  { %v3601_v24 = vpack.c.bf16 %v1235_v18, %v1235_v18  ;;  %v1360_v18 = vld [vmem:[%s3847_s5 + $0x3c8] sm:$0xff] }
 0x2b7   :  { %v3599_v23 = vpack.c.bf16 %v1236_v20, %v1236_v20  ;;  %v2541_v20 = vcombine.low %v1352_v14, %v1356_v15  ;;  %v2550_v21 = vcombine.high %v1360_v18, %v1364_v19  ;;  %v2549_v26 = vcombine.low %v1360_v18, %v1364_v19  ;;  %v1345_v15 = vld [vmem:[%s3847_s5 + $0x350] sm:$0xff] }
 0x2b8   :  { %v1353_v19 = vld [vmem:[%s3847_s5 + $0x390] sm:$0xff] }
 0x2b9   :  { %2081 = vmatprep.mubr.bf16.mxu1 %v3599_v23  ;;  %2204 = vmatprep.mubr.bf16.mxu0 %v3599_v23 }
 0x2ba   :  { %2082 = vmatmul.mubr.bf16.vlgmr.msra.gmra.mrb[4].mxu1 %v3601_v24  ;;  %2205 = vmatmul.mubr.bf16.vlgmr.msra.gmra.mrb[4].mxu0 %v3601_v24 }
 0x2bb   :  { %2091 = vmatpush1.bf16.msra.mxu1 %v2429_v48  ;;  %2122 = vmatprep.mubr.bf16.mxu1 %v3599_v23  ;;  %v2526_v48 = vcombine.high %v1336_v9, %v1340_v10  ;;  %v1329_v10 = vld [vmem:[%s3847_s5 + $0x2d0] sm:$0xff] }
 0x2bc   :  { %2092 = vmatprep.subr.bf16.mxu1 %v2438_v25  ;;  %v1245_v25 = vld [vmem:[%s3847_s5 + $0x30] sm:$0xff] }
 0x2bd   :  { %v2432_v27 = vcombine.high %v1241_v22, %v1245_v25  ;;  %v2431_v30 = vcombine.low %v1241_v22, %v1245_v25  ;;  %v1361_v25 = vld [vmem:[%s3847_s5 + $0x3d0] sm:$0xff] }
 0x2bf   :  { %2093 = vmatpush1.bf16.msra.mxu1 %v2437_v28  ;;  %v1249_v28 = vld [vmem:[%s3847_s5 + $0x50] sm:$0xff] }
 0x2c0   :  { %2094 = vmatprep.subr.bf16.mxu1 %v2446_v29  ;;  %v1253_v29 = vld [vmem:[%s3847_s5 + $0x70] sm:$0xff] }
 0x2c1   :  { %v2440_v31 = vcombine.high %v1249_v28, %v1253_v29  ;;  %v2439_v34 = vcombine.low %v1249_v28, %v1253_v29 }
 0x2c3   :  { %2095 = vmatpush1.bf16.msra.mxu1 %v2445_v32  ;;  %v1257_v32 = vld [vmem:[%s3847_s5 + $0x90] sm:$0xff] }
 0x2c4   :  { %2096 = vmatprep.subr.bf16.mxu1 %v2454_v33  ;;  %v1261_v33 = vld [vmem:[%s3847_s5 + $0xb0] sm:$0xff] }
 0x2c5   :  { %v2448_v35 = vcombine.high %v1257_v32, %v1261_v33  ;;  %v2447_v38 = vcombine.low %v1257_v32, %v1261_v33 }
 0x2c7   :  { %2097 = vmatpush1.bf16.msra.mxu1 %v2453_v36  ;;  %v1265_v36 = vld [vmem:[%s3847_s5 + $0xd0] sm:$0xff] }
 0x2c8   :  { %2098 = vmatprep.subr.bf16.mxu1 %v2462_v37  ;;  %v1269_v37 = vld [vmem:[%s3847_s5 + $0xf0] sm:$0xff] }
 0x2c9   :  { %v2456_v39 = vcombine.high %v1265_v36, %v1269_v37 }
 0x2cb   :  { %2099 = vmatpush1.bf16.msra.mxu1 %v2461_v40  ;;  %v1273_v40 = vld [vmem:[%s3847_s5 + $0x110] sm:$0xff] }
 0x2cc   :  { %2100 = vmatprep.subr.bf16.mxu1 %v2470_v41  ;;  %v2455_v41 = vcombine.low %v1265_v36, %v1269_v37 }
 0x2cf   :  { %2101 = vmatpush1.bf16.msra.mxu1 %v2469_v45  ;;  %v1285_v45 = vld [vmem:[%s3847_s5 + $0x170] sm:$0xff] }
 0x2d0   :  { %2102 = vmatprep.subr.bf16.mxu1 %v2478_v50  ;;  %v2472_v53 = vcombine.high %v1281_v44, %v1285_v45 }
 0x2d3   :  { %2103 = vmatpush1.bf16.msra.mxu1 %v2477_v55  ;;  %v1293_v55 = vld [vmem:[%s3847_s5 + $0x1b0] sm:$0xff] }
 0x2d4   :  { %2104 = vmatprep.subr.bf16.mxu1 %v2486_v56  ;;  %v2471_v56 = vcombine.low %v1281_v44, %v1285_v45  ;;  %v2480_v57 = vcombine.high %v1289_v54, %v1293_v55 }
 0x2d7   :  { %2105 = vmatpush1.bf16.msra.mxu1 %v2485_v59  ;;  %v1301_v59 = vld [vmem:[%s3847_s5 + $0x1f0] sm:$0xff] }
 0x2d8   :  { %2106 = vmatprep.subr.bf16.mxu1 %v2494_v60  ;;  %v2479_v60 = vcombine.low %v1289_v54, %v1293_v55  ;;  %v2488_v61 = vcombine.high %v1297_v58, %v1301_v59  ;;  %v1379_v55 = vsub.s32 2, %v3464_v46 }
 0x2db   :  { %2107 = vmatpush1.bf16.msra.mxu1 %v2493_v63  ;;  %v1309_v63 = vld [vmem:[%s3847_s5 + $0x230] sm:$0xff] }
 0x2dc   :  { %2108 = vmatprep.subr.bf16.mxu1 %v2502_v0  ;;  %v2487_v0 = vcombine.low %v1297_v58, %v1301_v59  ;;  %v2496_v1 = vcombine.high %v1305_v62, %v1309_v63 }
 0x2df   :  { %2109 = vmatpush1.bf16.msra.mxu1 %v2501_v3  ;;  %v1317_v3 = vld [vmem:[%s3847_s5 + $0x270] sm:$0xff] }
 0x2e0   :  { %2110 = vmatprep.subr.bf16.mxu1 %v2510_v4  ;;  %v2495_v4 = vcombine.low %v1305_v62, %v1309_v63  ;;  %v2504_v5 = vcombine.high %v1313_v2, %v1317_v3 }
 0x2e3   :  { %2111 = vmatpush1.bf16.msra.mxu1 %v2509_v7  ;;  %v1325_v7 = vld [vmem:[%s3847_s5 + $0x2b0] sm:$0xff] }
 0x2e4   :  { %2112 = vmatprep.subr.bf16.mxu1 %v2518_v8  ;;  %v2503_v8 = vcombine.low %v1313_v2, %v1317_v3  ;;  %v2512_v9 = vcombine.high %v1321_v6, %v1325_v7  ;;  %v2814_v3 = vld [vmem:[%s3845_s0 + $0x18] sm:$0xff] }
 0x2e7   :  { %2113 = vmatpush1.bf16.msra.mxu1 %v2517_v11  ;;  %v1333_v11 = vld [vmem:[%s3847_s5 + $0x2f0] sm:$0xff] }
 0x2e8   :  { %2114 = vmatprep.subr.bf16.mxu1 %v2526_v48  ;;  %v2511_v48 = vcombine.low %v1321_v6, %v1325_v7  ;;  %v2520_v49 = vcombine.high %v1329_v10, %v1333_v11 }
 0x2eb   :  { %2115 = vmatpush1.bf16.msra.mxu1 %v2525_v12  ;;  %v1341_v12 = vld [vmem:[%s3847_s5 + $0x330] sm:$0xff] }
 0x2ec   :  { %2116 = vmatprep.subr.bf16.mxu1 %v2534_v13  ;;  %v2519_v13 = vcombine.low %v1329_v10, %v1333_v11  ;;  %v2528_v14 = vcombine.high %v1337_v51, %v1341_v12  ;;  %v1395_v11 = vsub.s32 6, %v3464_v46 }
 0x2ef   :  { %2117 = vmatpush1.bf16.msra.mxu1 %v2533_v16  ;;  %v1349_v16 = vld [vmem:[%s3847_s5 + $0x370] sm:$0xff] }
 0x2f0   :  { %2118 = vmatprep.subr.bf16.mxu1 %v2542_v17  ;;  %v2527_v17 = vcombine.low %v1337_v51, %v1341_v12  ;;  %v2536_v18 = vcombine.high %v1345_v15, %v1349_v16  ;;  %v1391_v51 = vsub.s32 5, %v3464_v46 }
 0x2f3   :  { %2119 = vmatpush1.bf16.msra.mxu1 %v2541_v20  ;;  %v1357_v20 = vld [vmem:[%s3847_s5 + $0x3b0] sm:$0xff] }
 0x2f4   :  { %2120 = vmatprep.subr.bf16.mxu1 %v2550_v21  ;;  %v2535_v21 = vcombine.low %v1345_v15, %v1349_v16  ;;  %v2544_v22 = vcombine.high %v1353_v19, %v1357_v20 }
 0x2f7   :  { %2121 = vmatpush1.bf16.msra.mxu1 %v2549_v26  ;;  %v1365_v26 = vld [vmem:[%s3847_s5 + $0x3f0] sm:$0xff] }
 0x2f8   :  { %2131 = vmatprep.subr.bf16.mxu1 %v2432_v27  ;;  %v2543_v27 = vcombine.low %v1353_v19, %v1357_v20  ;;  %v2552_v28 = vcombine.high %v1361_v25, %v1365_v26  ;;  %v2551_v29 = vcombine.low %v1361_v25, %v1365_v26  ;;  %v2815_v26 = vld [vmem:[%s3845_s0 + $0x20] sm:$0xff] }
 0x2fa   :  { %2123 = vmatmul.mubr.bf16.vlgmr.msra.gmra.mrb[8].mxu1 %v3601_v24 }
 0x2fb   :  { %2132 = vmatpush1.bf16.msra.mxu1 %v2431_v30  ;;  %2163 = vmatprep.mubr.bf16.mxu1 %v3599_v23  ;;  %v1277_v23 = vld [vmem:[%s3847_s5 + $0x130] sm:$0xff]  ;;  %v1367_v30 = vld [vmem:[%s3850_s6] sm:$0xff] }
 0x2fc   :  { %2133 = vmatprep.subr.bf16.mxu1 %v2440_v31  ;;  %v2464_v43 = vcombine.high %v1273_v40, %v1277_v23  ;;  %v2463_v50 = vcombine.low %v1273_v40, %v1277_v23  ;;  %v1372_v31 = vrot.slane %v1367_v30, %v3467_v47  ;;  %v1376_v32 = vrot.slane %v1367_v30, %v3473_v52  ;;  %v2812_v47 = vld [vmem:[%s3845_s0 + $0x8] sm:$0xff] }
 0x2fd   :  { %v1396_v12 = vrot.slane %v1367_v30, %v1395_v11  ;;  %v1392_v15 = vrot.slane %v1367_v30, %v1391_v51 }
 0x2ff   :  { %2134 = vmatpush1.bf16.msra.mxu1 %v2439_v34 }
 0x300   :  { %2135 = vmatprep.subr.bf16.mxu1 %v2448_v35 }
 0x303   :  { %2136 = vmatpush1.bf16.msra.mxu1 %v2447_v38 }
 0x304   :  { %2137 = vmatprep.subr.bf16.mxu1 %v2456_v39 }
 0x307   :  { %2138 = vmatpush1.bf16.msra.mxu1 %v2455_v41 }
 0x308   :  { %2139 = vmatprep.subr.bf16.mxu1 %v2464_v43 }
 0x30b   :  { %2140 = vmatpush1.bf16.msra.mxu1 %v2463_v50 }
 0x30c   :  { %2141 = vmatprep.subr.bf16.mxu1 %v2472_v53 }
 0x30f   :  { %2142 = vmatpush1.bf16.msra.mxu1 %v2471_v56  ;;  %v1383_v56 = vsub.s32 3, %v3464_v46 }
 0x310   :  { %2143 = vmatprep.subr.bf16.mxu1 %v2480_v57  ;;  %v1380_v57 = vrot.slane %v1367_v30, %v1379_v55 }
 0x311   :  { %v1384_v58 = vrot.slane %v1367_v30, %v1383_v56 }
 0x313   :  { %2144 = vmatpush1.bf16.msra.mxu1 %v2479_v60 }
 0x314   :  { %2145 = vmatprep.subr.bf16.mxu1 %v2488_v61 }
 0x317   :  { %2146 = vmatpush1.bf16.msra.mxu1 %v2487_v0  ;;  %v2813_v0 = vld [vmem:[%s3845_s0 + $0x10] sm:$0xff] }
 0x318   :  { %2147 = vmatprep.subr.bf16.mxu1 %v2496_v1 }
 0x31b   :  { %2148 = vmatpush1.bf16.msra.mxu1 %v2495_v4 }
 0x31c   :  { %2149 = vmatprep.subr.bf16.mxu1 %v2504_v5 }
 0x31f   :  { %2150 = vmatpush1.bf16.msra.mxu1 %v2503_v8 }
 0x320   :  { %2151 = vmatprep.subr.bf16.mxu1 %v2512_v9 }
 0x323   :  { %2152 = vmatpush1.bf16.msra.mxu1 %v2511_v48  ;;  %v1399_v48 = vsub.s32 7, %v3464_v46 }
 0x324   :  { %2153 = vmatprep.subr.bf16.mxu1 %v2520_v49  ;;  %v1387_v49 = vsub.s32 4, %v3464_v46 }
 0x327   :  { %2154 = vmatpush1.bf16.msra.mxu1 %v2519_v13  ;;  %v1400_v13 = vrot.slane %v1367_v30, %v1399_v48 }
 0x328   :  { %2155 = vmatprep.subr.bf16.mxu1 %v2528_v14  ;;  %v1388_v14 = vrot.slane %v1367_v30, %v1387_v49 }
 0x32b   :  { %2156 = vmatpush1.bf16.msra.mxu1 %v2527_v17 }
 0x32c   :  { %2157 = vmatprep.subr.bf16.mxu1 %v2536_v18 }
 0x32f   :  { %2158 = vmatpush1.bf16.msra.mxu1 %v2535_v21 }
 0x330   :  { %2159 = vmatprep.subr.bf16.mxu1 %v2544_v22 }
 0x333   :  { %2160 = vmatpush1.bf16.msra.mxu1 %v2543_v27 }
 0x334   :  { %2161 = vmatprep.subr.bf16.mxu1 %v2552_v28 }
 0x337   :  { %2162 = vmatpush1.bf16.msra.mxu1 %v2551_v29  ;;  %v2816_v29 = vld [vmem:[%s3845_s0 + $0x28] sm:$0xff] }
 0x33a   :  { %2164 = vmatmul.mubr.bf16.vlgmr.msra.gmra.mrb[12].mxu1 %v3601_v24  ;;  %v2811_v24 = vld [vmem:[%s3845_s0] sm:$0xff] }
 0x38d   :  { %v2083_v33 = vpop.f32.mrb[4].mxu1  ;;  %v2206_v34 = vpop.f32.mrb[4].mxu0 }
 0x38e   :  { %v2084_v35 = vadd.f32 %v2083_v33, %v1372_v31  ;;  %v2085_v36 = vpop.f32.mrb[5].mxu1  ;;  %v2208_v37 = vpop.f32.mrb[5].mxu0  ;;  %v2207_v16 = vadd.f32 %v2206_v34, %v1396_v12  ;;  %v2817_v31 = vld [vmem:[%s3845_s0 + $0x38] sm:$0xff] }
 0x38f   :  { %v2086_v38 = vadd.f32 %v2085_v36, %v1376_v32  ;;  %v2087_v39 = vpop.f32.mrb[6].mxu1  ;;  %v2210_v40 = vpop.f32.mrb[6].mxu0  ;;  %v2209_v18 = vadd.f32 %v2208_v37, %v1400_v13 }
 0x390   :  { %v2213_v23 = vsub.f32 %v2084_v35, %v2811_v24  ;;  %v2088_v41 = vpop.f32.mrb[7].mxu1  ;;  %v2211_v43 = vpop.f32.mrb[7].mxu0  ;;  %v2219_v25 = vsub.f32 %v2207_v16, %v3350_v42 }
 0x391   :  { %v2214_v52 = vsub.f32 %v2086_v38, %v2812_v47  ;;  %v2220_v32 = vsub.f32 %v2209_v18, %v2817_v31 }
 0x392   :  { %v2229_v44 = vsel %vm2226_vm0, %v2213_v23, 0.0  ;;  %v2235_v36 = vsel %vm2226_vm0, %v2219_v25, 0.0 }
 0x393   :  { %v2237_v45 = vmul.f32 %v2229_v44, %v2229_v44  ;;  %v2230_v50 = vsel %vm2226_vm0, %v2214_v52, 0.0  ;;  %v2236_v38 = vsel %vm2226_vm0, %v2220_v32, 0.0  ;;  %v2243_v39 = vmul.f32 %v2235_v36, %v2235_v36 }
 0x394   :  { %v2238_v53 = vmul.f32 %v2230_v50, %v2230_v50  ;;  %v2244_v24 = vmul.f32 %v2236_v38, %v2236_v38 }
 0x396   :  { %v2245_v54 = vadd.f32 %v2238_v53, %v2237_v45 }
 0x3cd   :  { %v2124_v59 = vpop.f32.mrb[8].mxu1 }
 0x3ce   :  { %v2125_v60 = vadd.f32 %v2124_v59, %v1380_v57  ;;  %v2126_v61 = vpop.f32.mrb[9].mxu1 }
 0x3cf   :  { %v2127_v62 = vadd.f32 %v2126_v61, %v1384_v58  ;;  %v2128_v63 = vpop.f32.mrb[10].mxu1 }
 0x3d0   :  { %v2215_v1 = vsub.f32 %v2125_v60, %v2813_v0  ;;  %v2129_v2 = vpop.f32.mrb[11].mxu1 }
 0x3d1   :  { %v2216_v4 = vsub.f32 %v2127_v62, %v2814_v3 }
 0x3d2   :  { %v2231_v5 = vsel %vm2226_vm0, %v2215_v1, 0.0 }
 0x3d3   :  { %v2239_v6 = vmul.f32 %v2231_v5, %v2231_v5  ;;  %v2232_v7 = vsel %vm2226_vm0, %v2216_v4, 0.0 }
 0x3d4   :  { %v2240_v8 = vmul.f32 %v2232_v7, %v2232_v7 }
 0x3d5   :  { %v2246_v9 = vadd.f32 %v2245_v54, %v2239_v6 }
 0x3d7   :  { %v2247_v10 = vadd.f32 %v2246_v9, %v2240_v8 }
 0x40d   :  { %v2165_v17 = vpop.f32.mrb[12].mxu1 }
 0x40e   :  { %v2166_v19 = vadd.f32 %v2165_v17, %v1388_v14  ;;  %v2167_v20 = vpop.f32.mrb[13].mxu1 }
 0x40f   :  { %v2168_v21 = vadd.f32 %v2167_v20, %v1392_v15  ;;  %v2169_v22 = vpop.f32.mrb[14].mxu1 }
 0x410   :  { %v2217_v27 = vsub.f32 %v2166_v19, %v2815_v26  ;;  %v2170_v28 = vpop.f32.mrb[15].mxu1 }
 0x411   :  { %v2218_v30 = vsub.f32 %v2168_v21, %v2816_v29 }
 0x412   :  { %v2233_v33 = vsel %vm2226_vm0, %v2217_v27, 0.0 }
 0x413   :  { %v2241_v42 = vmul.f32 %v2233_v33, %v2233_v33  ;;  %v2234_v34 = vsel %vm2226_vm0, %v2218_v30, 0.0 }
 0x414   :  { %v2242_v35 = vmul.f32 %v2234_v34, %v2234_v34 }
 0x415   :  { %v2248_v37 = vadd.f32 %v2247_v10, %v2241_v42 }
 0x417   :  { %v2249_v40 = vadd.f32 %v2248_v37, %v2242_v35 }
 0x419   :  { %v2250_v23 = vadd.f32 %v2249_v40, %v2243_v39 }
 0x41b   :  { %v2251_v41 = vadd.f32 %v2250_v23, %v2244_v24 }
 0x41d   :  { %2252 = vadd.xlane.f32.xlu0 %v2251_v41 }
 0x4aa   :  { %v2253_v43 = vpop.xlane.xlu0 %2252 }
 0x4ab   :  { %v2254_v47 = vrot.slane %v2253_v43, 4 }
 0x4ad   :  { %v2255_v52 = vadd.f32 %v2254_v47, %v2253_v43 }
 0x4af   :  { %v2256_v44 = vrot.slane %v2255_v52, 2 }
 0x4b1   :  { %v2257_v45 = vadd.f32 %v2256_v44, %v2255_v52 }
 0x4b3   :  { %v2258_v50 = vrot.slane %v2257_v45, 1 }
 0x4b5   :  { %v2259_v53 = vadd.f32 %v2258_v50, %v2257_v45 }
 0x4b7   :  { %2569 = vpush %v2259_v53 }
 0x4e8   :  { %s2570_s0 = spop %2569 }
 0x4e9   :  { %v2261_v54 = vstv %s2570_s0 }
 0x4ea   :  { %2262 = vst [vmem:[%s3851_s7] sm:$0xff] %v2261_v54 }

</bundles_post_ra>
